<compile_context>
chip_gen: v7x
topology: tpu7x:2x2x1
jax: 0.10.0
libtpu: 0.0.40
codegen_flags: <defaults>
</compile_context>

<pallas_src>
import functools

import jax
import jax.numpy as jnp
from jax.experimental import pallas as pl
from jax.experimental.pallas import tpu as pltpu

_EPS = 1e-5
_MARGIN = 128   # zero margin (flat positions) so every 3x3 tap is an in-bounds window


# ---------------------------------------------------------------------------
# Fused BasicBlock kernel
# ---------------------------------------------------------------------------
def _basic_block_kernel(x_ref, w1_ref, w2_ref, gb_ref, mask_ref, out_ref, h1_ref,
                        *, wp, m_win, inv_cnt, planes):
    """Fused BasicBlock forward on a channel-major flattened padded image.

    x_ref   : (C, L) f32, L = 2*_MARGIN + m_win, zeros outside the padded image
    w1_ref  : (9*planes, C)      f32, rows [k*planes:(k+1)*planes] = w1[ky,kx].T, k=3*ky+kx
    w2_ref  : (9*planes, planes) f32, same tap-major layout for conv2
    gb_ref  : (planes, 4)        f32, columns = [gamma1, beta1, gamma2, beta2]
    mask_ref: (1, m_win)         f32, 1.0 at valid (interior) output positions
    out_ref : (planes, m_win)    f32
    h1_ref  : (planes, L)        f32 VMEM scratch for the conv1->bn1->relu activation
    """
    mask = mask_ref[...]
    offsets = [(ky - 1) * wp + (kx - 1) for ky in range(3) for kx in range(3)]

    def conv3x3(src_ref, w_ref):
        # 9 statically shifted window taps accumulated on the MXU (bf16 x bf16 -> f32).
        acc = jnp.zeros((planes, m_win), jnp.float32)
        for k, off in enumerate(offsets):
            w_tap = w_ref[k * planes:(k + 1) * planes, :].astype(jnp.bfloat16)
            lo = _MARGIN + off
            x_tap = src_ref[:, lo:lo + m_win].astype(jnp.bfloat16)
            acc = acc + jnp.dot(w_tap, x_tap, preferred_element_type=jnp.float32)
        return acc

    def batchnorm(acc, col):
        # Training-mode BN over valid positions, folded to per-channel scale/bias.
        g = gb_ref[:, col:col + 1]
        b = gb_ref[:, col + 1:col + 2]
        s1 = jnp.sum(acc * mask, axis=1, keepdims=True)
        s2 = jnp.sum(acc * acc * mask, axis=1, keepdims=True)
        mean = s1 * inv_cnt
        var = s2 * inv_cnt - mean * mean
        scale = g * jax.lax.rsqrt(var + _EPS)
        bias = b - mean * scale
        return acc * scale + bias

    # ---- conv1 -> bn1 -> relu (stays entirely in VMEM) ----
    h1 = jnp.maximum(batchnorm(conv3x3(x_ref, w1_ref), 0), 0.0) * mask
    h1_ref[...] = jnp.zeros(h1_ref.shape, jnp.float32)           # zero margins / pad ring
    h1_ref[:, _MARGIN:_MARGIN + m_win] = h1

    # ---- conv2 -> bn2 -> +identity residual -> relu ----
    y = batchnorm(conv3x3(h1_ref, w2_ref), 2)
    residual = x_ref[:, _MARGIN:_MARGIN + m_win]                 # identity path (C == planes)
    out_ref[...] = jnp.maximum(y + residual, 0.0).astype(out_ref.dtype)


# ---------------------------------------------------------------------------
# Wrapper: NCHW in / NCHW out, layout plumbing only
# ---------------------------------------------------------------------------
@jax.jit
def basic_block_forward(x_nchw, w1, g1, b1, w2, g2, b2):
    """BasicBlock forward (stride=1, downsample=None). x: NCHW, weights: HWIO (3,3,Cin,Cout)."""
    B, C, H, W = x_nchw.shape
    planes = w1.shape[3]
    assert C == planes, "identity residual requires inplanes == planes"
    # TODO(synk): stride != 1 and the externally injected `downsample` submodule are not implemented.

    Hp, Wp = H + 2, W + 2
    M = B * Hp * Wp                             # flattened padded positions
    m_win = ((M + 127) // 128) * 128            # lane-dense window (multiple of 128)
    L = m_win + 2 * _MARGIN
    inv_cnt = 1.0 / float(B * H * W)            # BN statistics count (valid positions)

    # Channel-major, spatially zero-padded, flattened activation with zero margins.
    x_pad = jnp.pad(x_nchw, ((0, 0), (0, 0), (1, 1), (1, 1)))          # (B,C,Hp,Wp)
    x_flat = jnp.transpose(x_pad, (1, 0, 2, 3)).reshape(C, M)          # (C, M)
    x_ext = jnp.pad(x_flat, ((0, 0), (_MARGIN, L - _MARGIN - M)))      # (C, L)

    # Valid-position mask: interior of each padded image; zero on pad ring and tail.
    ys = jnp.arange(Hp)
    xs = jnp.arange(Wp)
    m_img = ((ys[:, None] >= 1) & (ys[:, None] <= Hp - 2) &
             (xs[None, :] >= 1) & (xs[None, :] <= Wp - 2)).astype(jnp.float32)
    mask = jnp.tile(m_img.reshape(-1), B)
    mask = jnp.pad(mask, (0, m_win - M)).reshape(1, m_win)

    # Tap-major weights: rows [k*planes:(k+1)*planes] = w[ky, kx].T with k = 3*ky + kx.
    w1_taps = jnp.transpose(w1, (0, 1, 3, 2)).reshape(9 * planes, C)
    w2_taps = jnp.transpose(w2, (0, 1, 3, 2)).reshape(9 * planes, planes)

    # All BN affine params packed into one small input.
    gb = jnp.stack([g1, b1, g2, b2], axis=1).astype(jnp.float32)       # (planes, 4)

    kernel = functools.partial(_basic_block_kernel, wp=Wp, m_win=m_win,
                               inv_cnt=inv_cnt, planes=planes)

    out_flat = pl.pallas_call(
        kernel,
        out_shape=jax.ShapeDtypeStruct((planes, m_win), jnp.float32),
        grid=(1,),
        in_specs=[
            pl.BlockSpec((C, L), lambda i: (0, 0)),
            pl.BlockSpec((9 * planes, C), lambda i: (0, 0)),
            pl.BlockSpec((9 * planes, planes), lambda i: (0, 0)),
            pl.BlockSpec((planes, 4), lambda i: (0, 0)),
            pl.BlockSpec((1, m_win), lambda i: (0, 0)),
        ],
        out_specs=pl.BlockSpec((planes, m_win), lambda i: (0, 0)),
        scratch_shapes=[pltpu.VMEM((planes, L), jnp.float32)],
        compiler_params=pltpu.CompilerParams(dimension_semantics=("arbitrary",)),
    )(x_ext, w1_taps, w2_taps, gb, mask)

    # Extract the valid interior and return NCHW.
    out = out_flat[:, :M].reshape(planes, B, Hp, Wp)[:, :, 1:Hp - 1, 1:Wp - 1]
    return jnp.transpose(out, (1, 0, 2, 3))


# ---------------------------------------------------------------------------
# Pure-JAX reference (for correctness check)
# ---------------------------------------------------------------------------
def _reference(x, w1, g1, b1, w2, g2, b2, matmul_dtype=jnp.float32):
    def conv(inp, w_hwio):
        return jax.lax.conv_general_dilated(
            inp.astype(matmul_dtype),
            jnp.transpose(w_hwio, (3, 2, 0, 1)).astype(matmul_dtype),   # HWIO -> OIHW
            window_strides=(1, 1), padding=((1, 1), (1, 1)),
            dimension_numbers=("NCHW", "OIHW", "NCHW"),
            preferred_element_type=jnp.float32)

    def bn(t, g, b):
        mean = jnp.mean(t, axis=(0, 2, 3), keepdims=True)
        var = jnp.mean((t - mean) ** 2, axis=(0, 2, 3), keepdims=True)
        return ((t - mean) * jax.lax.rsqrt(var + _EPS) * g.reshape(1, -1, 1, 1)
                + b.reshape(1, -1, 1, 1))

    h = jax.nn.relu(bn(conv(x, w1), g1, b1))
    return jax.nn.relu(bn(conv(h, w2), g2, b2) + x)


if __name__ == "__main__":
    key = jax.random.PRNGKey(0)
    kx, k1, k2, kg1, kb1, kg2, kb2 = jax.random.split(key, 7)

    B, C, H, W = 2, 8, 16, 16            # inplanes == planes (identity-residual path)
    planes = 8

    x = jax.random.normal(kx, (B, C, H, W), jnp.float32)
    w1 = jax.random.normal(k1, (3, 3, C, planes), jnp.float32) * 0.1        # HWIO
    w2 = jax.random.normal(k2, (3, 3, planes, planes), jnp.float32) * 0.1   # HWIO
    g1 = 1.0 + 0.1 * jax.random.normal(kg1, (planes,), jnp.float32)
    b1 = 0.1 * jax.random.normal(kb1, (planes,), jnp.float32)
    g2 = 1.0 + 0.1 * jax.random.normal(kg2, (planes,), jnp.float32)
    b2 = 0.1 * jax.random.normal(kb2, (planes,), jnp.float32)

    out = jax.block_until_ready(basic_block_forward(x, w1, g1, b1, w2, g2, b2))
    assert out.shape == (B, planes, H, W), out.shape

    # Tight check vs. a reference that also feeds the convs bf16 (same MXU rounding),
    # loose sanity check vs. the full-f32 reference (PyTorch-equivalent math).
    ref_bf = jax.block_until_ready(_reference(x, w1, g1, b1, w2, g2, b2, jnp.bfloat16))
    ref_f32 = jax.block_until_ready(_reference(x, w1, g1, b1, w2, g2, b2, jnp.float32))
    err_bf = float(jnp.max(jnp.abs(out - ref_bf)))
    err_f32 = float(jnp.max(jnp.abs(out - ref_f32)))
    assert err_bf < 2e-2, f"bf16-matched reference mismatch: {err_bf}"
    assert err_f32 < 1e-1, f"f32 reference mismatch: {err_f32}"

    print("KERNEL_OK")
</pallas_src>

<mosaic_0001>
module attributes {stable_mosaic.version = 11 : i64} {
  func.func @_basic_block_kernel(%arg0: i32, %arg1: memref<8x1024xf32, #tpu.memory_space<vmem>>, %arg2: memref<72x8xf32, #tpu.memory_space<vmem>>, %arg3: memref<72x8xf32, #tpu.memory_space<vmem>>, %arg4: memref<8x4xf32, #tpu.memory_space<vmem>>, %arg5: memref<1x768xf32, #tpu.memory_space<vmem>>, %arg6: memref<8x768xf32, #tpu.memory_space<vmem>>, %arg7: memref<8x1024xf32, #tpu.memory_space<vmem>>) attributes {dimension_semantics = [#tpu.dimension_semantics<arbitrary>], iteration_bounds = array<i64: 1>, scalar_prefetch = 0 : i64, scratch_operands = 1 : i64, tpu.core_type = #tpu.core_type<tc>, window_params = [{pipeline_mode = #tpu.pipeline_mode<synchronous>, transform_indices = @transform_0, window_bounds = array<i64: 8, 1024>}, {pipeline_mode = #tpu.pipeline_mode<synchronous>, transform_indices = @transform_1, window_bounds = array<i64: 72, 8>}, {pipeline_mode = #tpu.pipeline_mode<synchronous>, transform_indices = @transform_2, window_bounds = array<i64: 72, 8>}, {pipeline_mode = #tpu.pipeline_mode<synchronous>, transform_indices = @transform_3, window_bounds = array<i64: 8, 4>}, {pipeline_mode = #tpu.pipeline_mode<synchronous>, transform_indices = @transform_4, window_bounds = array<i64: 1, 768>}, {pipeline_mode = #tpu.pipeline_mode<synchronous>, transform_indices = @transform_5, window_bounds = array<i64: 8, 768>}]} {
    %c0 = arith.constant 0 : index
    %c0_0 = arith.constant 0 : index
    %0 = vector.load %arg5[%c0, %c0_0] : memref<1x768xf32, #tpu.memory_space<vmem>>, vector<1x768xf32>
    %cst = arith.constant 0.000000e+00 : f32
    %1 = vector.broadcast %cst : f32 to vector<8x768xf32>
    %c0_1 = arith.constant 0 : index
    %c0_2 = arith.constant 0 : index
    %2 = vector.load %arg2[%c0_1, %c0_2] : memref<72x8xf32, #tpu.memory_space<vmem>>, vector<8x8xf32>
    %3 = arith.truncf %2 : vector<8x8xf32> to vector<8x8xbf16>
    %c0_3 = arith.constant 0 : index
    %c109 = arith.constant 109 : index
    %4 = vector.load %arg1[%c0_3, %c109] : memref<8x1024xf32, #tpu.memory_space<vmem>>, vector<8x768xf32>
    %5 = arith.truncf %4 : vector<8x768xf32> to vector<8x768xbf16>
    %cst_4 = arith.constant dense<0.000000e+00> : vector<8x768xf32>
    %6 = tpu.matmul %3, %5, %cst_4 {dimension_numbers = #tpu.dot_dimension_numbers<[1], [0], [0], [1], [0, 0, 1, 1], [], []>} : vector<8x8xbf16>, vector<8x768xbf16>, vector<8x768xf32> -> vector<8x768xf32>
    %7 = arith.addf %1, %6 : vector<8x768xf32>
    %c8 = arith.constant 8 : index
    %c0_5 = arith.constant 0 : index
    %8 = vector.load %arg2[%c8, %c0_5] : memref<72x8xf32, #tpu.memory_space<vmem>>, vector<8x8xf32>
    %9 = arith.truncf %8 : vector<8x8xf32> to vector<8x8xbf16>
    %c0_6 = arith.constant 0 : index
    %c110 = arith.constant 110 : index
    %10 = vector.load %arg1[%c0_6, %c110] : memref<8x1024xf32, #tpu.memory_space<vmem>>, vector<8x768xf32>
    %11 = arith.truncf %10 : vector<8x768xf32> to vector<8x768xbf16>
    %cst_7 = arith.constant dense<0.000000e+00> : vector<8x768xf32>
    %12 = tpu.matmul %9, %11, %cst_7 {dimension_numbers = #tpu.dot_dimension_numbers<[1], [0], [0], [1], [0, 0, 1, 1], [], []>} : vector<8x8xbf16>, vector<8x768xbf16>, vector<8x768xf32> -> vector<8x768xf32>
    %13 = arith.addf %7, %12 : vector<8x768xf32>
    %c16 = arith.constant 16 : index
    %c0_8 = arith.constant 0 : index
    %14 = vector.load %arg2[%c16, %c0_8] : memref<72x8xf32, #tpu.memory_space<vmem>>, vector<8x8xf32>
    %15 = arith.truncf %14 : vector<8x8xf32> to vector<8x8xbf16>
    %c0_9 = arith.constant 0 : index
    %c111 = arith.constant 111 : index
    %16 = vector.load %arg1[%c0_9, %c111] : memref<8x1024xf32, #tpu.memory_space<vmem>>, vector<8x768xf32>
    %17 = arith.truncf %16 : vector<8x768xf32> to vector<8x768xbf16>
    %cst_10 = arith.constant dense<0.000000e+00> : vector<8x768xf32>
    %18 = tpu.matmul %15, %17, %cst_10 {dimension_numbers = #tpu.dot_dimension_numbers<[1], [0], [0], [1], [0, 0, 1, 1], [], []>} : vector<8x8xbf16>, vector<8x768xbf16>, vector<8x768xf32> -> vector<8x768xf32>
    %19 = arith.addf %13, %18 : vector<8x768xf32>
    %c24 = arith.constant 24 : index
    %c0_11 = arith.constant 0 : index
    %20 = vector.load %arg2[%c24, %c0_11] : memref<72x8xf32, #tpu.memory_space<vmem>>, vector<8x8xf32>
    %21 = arith.truncf %20 : vector<8x8xf32> to vector<8x8xbf16>
    %c0_12 = arith.constant 0 : index
    %c127 = arith.constant 127 : index
    %22 = vector.load %arg1[%c0_12, %c127] : memref<8x1024xf32, #tpu.memory_space<vmem>>, vector<8x768xf32>
    %23 = arith.truncf %22 : vector<8x768xf32> to vector<8x768xbf16>
    %cst_13 = arith.constant dense<0.000000e+00> : vector<8x768xf32>
    %24 = tpu.matmul %21, %23, %cst_13 {dimension_numbers = #tpu.dot_dimension_numbers<[1], [0], [0], [1], [0, 0, 1, 1], [], []>} : vector<8x8xbf16>, vector<8x768xbf16>, vector<8x768xf32> -> vector<8x768xf32>
    %25 = arith.addf %19, %24 : vector<8x768xf32>
    %c32 = arith.constant 32 : index
    %c0_14 = arith.constant 0 : index
    %26 = vector.load %arg2[%c32, %c0_14] : memref<72x8xf32, #tpu.memory_space<vmem>>, vector<8x8xf32>
    %27 = arith.truncf %26 : vector<8x8xf32> to vector<8x8xbf16>
    %c0_15 = arith.constant 0 : index
    %c128 = arith.constant 128 : index
    %28 = vector.load %arg1[%c0_15, %c128] : memref<8x1024xf32, #tpu.memory_space<vmem>>, vector<8x768xf32>
    %29 = arith.truncf %28 : vector<8x768xf32> to vector<8x768xbf16>
    %cst_16 = arith.constant dense<0.000000e+00> : vector<8x768xf32>
    %30 = tpu.matmul %27, %29, %cst_16 {dimension_numbers = #tpu.dot_dimension_numbers<[1], [0], [0], [1], [0, 0, 1, 1], [], []>} : vector<8x8xbf16>, vector<8x768xbf16>, vector<8x768xf32> -> vector<8x768xf32>
    %31 = arith.addf %25, %30 : vector<8x768xf32>
    %c40 = arith.constant 40 : index
    %c0_17 = arith.constant 0 : index
    %32 = vector.load %arg2[%c40, %c0_17] : memref<72x8xf32, #tpu.memory_space<vmem>>, vector<8x8xf32>
    %33 = arith.truncf %32 : vector<8x8xf32> to vector<8x8xbf16>
    %c0_18 = arith.constant 0 : index
    %c129 = arith.constant 129 : index
    %34 = vector.load %arg1[%c0_18, %c129] : memref<8x1024xf32, #tpu.memory_space<vmem>>, vector<8x768xf32>
    %35 = arith.truncf %34 : vector<8x768xf32> to vector<8x768xbf16>
    %cst_19 = arith.constant dense<0.000000e+00> : vector<8x768xf32>
    %36 = tpu.matmul %33, %35, %cst_19 {dimension_numbers = #tpu.dot_dimension_numbers<[1], [0], [0], [1], [0, 0, 1, 1], [], []>} : vector<8x8xbf16>, vector<8x768xbf16>, vector<8x768xf32> -> vector<8x768xf32>
    %37 = arith.addf %31, %36 : vector<8x768xf32>
    %c48 = arith.constant 48 : index
    %c0_20 = arith.constant 0 : index
    %38 = vector.load %arg2[%c48, %c0_20] : memref<72x8xf32, #tpu.memory_space<vmem>>, vector<8x8xf32>
    %39 = arith.truncf %38 : vector<8x8xf32> to vector<8x8xbf16>
    %c0_21 = arith.constant 0 : index
    %c145 = arith.constant 145 : index
    %40 = vector.load %arg1[%c0_21, %c145] : memref<8x1024xf32, #tpu.memory_space<vmem>>, vector<8x768xf32>
    %41 = arith.truncf %40 : vector<8x768xf32> to vector<8x768xbf16>
    %cst_22 = arith.constant dense<0.000000e+00> : vector<8x768xf32>
    %42 = tpu.matmul %39, %41, %cst_22 {dimension_numbers = #tpu.dot_dimension_numbers<[1], [0], [0], [1], [0, 0, 1, 1], [], []>} : vector<8x8xbf16>, vector<8x768xbf16>, vector<8x768xf32> -> vector<8x768xf32>
    %43 = arith.addf %37, %42 : vector<8x768xf32>
    %c56 = arith.constant 56 : index
    %c0_23 = arith.constant 0 : index
    %44 = vector.load %arg2[%c56, %c0_23] : memref<72x8xf32, #tpu.memory_space<vmem>>, vector<8x8xf32>
    %45 = arith.truncf %44 : vector<8x8xf32> to vector<8x8xbf16>
    %c0_24 = arith.constant 0 : index
    %c146 = arith.constant 146 : index
    %46 = vector.load %arg1[%c0_24, %c146] : memref<8x1024xf32, #tpu.memory_space<vmem>>, vector<8x768xf32>
    %47 = arith.truncf %46 : vector<8x768xf32> to vector<8x768xbf16>
    %cst_25 = arith.constant dense<0.000000e+00> : vector<8x768xf32>
    %48 = tpu.matmul %45, %47, %cst_25 {dimension_numbers = #tpu.dot_dimension_numbers<[1], [0], [0], [1], [0, 0, 1, 1], [], []>} : vector<8x8xbf16>, vector<8x768xbf16>, vector<8x768xf32> -> vector<8x768xf32>
    %49 = arith.addf %43, %48 : vector<8x768xf32>
    %c64 = arith.constant 64 : index
    %c0_26 = arith.constant 0 : index
    %50 = vector.load %arg2[%c64, %c0_26] : memref<72x8xf32, #tpu.memory_space<vmem>>, vector<8x8xf32>
    %51 = arith.truncf %50 : vector<8x8xf32> to vector<8x8xbf16>
    %c0_27 = arith.constant 0 : index
    %c147 = arith.constant 147 : index
    %52 = vector.load %arg1[%c0_27, %c147] : memref<8x1024xf32, #tpu.memory_space<vmem>>, vector<8x768xf32>
    %53 = arith.truncf %52 : vector<8x768xf32> to vector<8x768xbf16>
    %cst_28 = arith.constant dense<0.000000e+00> : vector<8x768xf32>
    %54 = tpu.matmul %51, %53, %cst_28 {dimension_numbers = #tpu.dot_dimension_numbers<[1], [0], [0], [1], [0, 0, 1, 1], [], []>} : vector<8x8xbf16>, vector<8x768xbf16>, vector<8x768xf32> -> vector<8x768xf32>
    %55 = arith.addf %49, %54 : vector<8x768xf32>
    %c0_29 = arith.constant 0 : index
    %c0_30 = arith.constant 0 : index
    %56 = vector.load %arg4[%c0_29, %c0_30] : memref<8x4xf32, #tpu.memory_space<vmem>>, vector<8x1xf32>
    %c0_31 = arith.constant 0 : index
    %c1 = arith.constant 1 : index
    %57 = vector.load %arg4[%c0_31, %c1] : memref<8x4xf32, #tpu.memory_space<vmem>>, vector<8x1xf32>
    %58 = vector.broadcast %0 : vector<1x768xf32> to vector<8x768xf32>
    %59 = arith.mulf %55, %58 : vector<8x768xf32>
    %cst_32 = arith.constant dense<0.000000e+00> : vector<8xf32>
    %60 = vector.multi_reduction <add>, %59, %cst_32 [1] : vector<8x768xf32> to vector<8xf32>
    %61 = vector.shape_cast %60 : vector<8xf32> to vector<8x1xf32>
    %62 = arith.mulf %55, %55 : vector<8x768xf32>
    %63 = vector.broadcast %0 : vector<1x768xf32> to vector<8x768xf32>
    %64 = arith.mulf %62, %63 : vector<8x768xf32>
    %cst_33 = arith.constant dense<0.000000e+00> : vector<8xf32>
    %65 = vector.multi_reduction <add>, %64, %cst_33 [1] : vector<8x768xf32> to vector<8xf32>
    %66 = vector.shape_cast %65 : vector<8xf32> to vector<8x1xf32>
    %cst_34 = arith.constant 0.001953125 : f32
    %67 = vector.broadcast %cst_34 : f32 to vector<8x1xf32>
    %68 = arith.mulf %61, %67 : vector<8x1xf32>
    %cst_35 = arith.constant 0.001953125 : f32
    %69 = vector.broadcast %cst_35 : f32 to vector<8x1xf32>
    %70 = arith.mulf %66, %69 : vector<8x1xf32>
    %71 = arith.mulf %68, %68 : vector<8x1xf32>
    %72 = arith.subf %70, %71 : vector<8x1xf32>
    %cst_36 = arith.constant 9.99999974E-6 : f32
    %73 = vector.broadcast %cst_36 : f32 to vector<8x1xf32>
    %74 = arith.addf %72, %73 : vector<8x1xf32>
    %75 = math.rsqrt %74 : vector<8x1xf32>
    %76 = arith.mulf %56, %75 : vector<8x1xf32>
    %77 = arith.mulf %68, %76 : vector<8x1xf32>
    %78 = arith.subf %57, %77 : vector<8x1xf32>
    %79 = vector.broadcast %76 : vector<8x1xf32> to vector<8x768xf32>
    %80 = arith.mulf %55, %79 : vector<8x768xf32>
    %81 = vector.broadcast %78 : vector<8x1xf32> to vector<8x768xf32>
    %82 = arith.addf %80, %81 : vector<8x768xf32>
    %cst_37 = arith.constant 0.000000e+00 : f32
    %83 = vector.broadcast %cst_37 : f32 to vector<8x768xf32>
    %84 = arith.maximumf %82, %83 : vector<8x768xf32>
    %85 = vector.broadcast %0 : vector<1x768xf32> to vector<8x768xf32>
    %86 = arith.mulf %84, %85 : vector<8x768xf32>
    %cst_38 = arith.constant 0.000000e+00 : f32
    %87 = vector.broadcast %cst_38 : f32 to vector<8x1024xf32>
    %c0_39 = arith.constant 0 : index
    %c0_40 = arith.constant 0 : index
    %88 = vector.load %arg7[%c0_39, %c0_40] : memref<8x1024xf32, #tpu.memory_space<vmem>>, vector<8x1024xf32>
    tpu.vector_store %arg7[%c0_39, %c0_40], %87 {strides = array<i32>} : memref<8x1024xf32, #tpu.memory_space<vmem>>, vector<8x1024xf32>,
    %c0_41 = arith.constant 0 : index
    %c128_42 = arith.constant 128 : index
    %89 = vector.load %arg7[%c0_41, %c128_42] : memref<8x1024xf32, #tpu.memory_space<vmem>>, vector<8x768xf32>
    tpu.vector_store %arg7[%c0_41, %c128_42], %86 {strides = array<i32>} : memref<8x1024xf32, #tpu.memory_space<vmem>>, vector<8x768xf32>,
    %cst_43 = arith.constant 0.000000e+00 : f32
    %90 = vector.broadcast %cst_43 : f32 to vector<8x768xf32>
    %c0_44 = arith.constant 0 : index
    %c0_45 = arith.constant 0 : index
    %91 = vector.load %arg3[%c0_44, %c0_45] : memref<72x8xf32, #tpu.memory_space<vmem>>, vector<8x8xf32>
    %92 = arith.truncf %91 : vector<8x8xf32> to vector<8x8xbf16>
    %c0_46 = arith.constant 0 : index
    %c109_47 = arith.constant 109 : index
    %93 = vector.load %arg7[%c0_46, %c109_47] : memref<8x1024xf32, #tpu.memory_space<vmem>>, vector<8x768xf32>
    %94 = arith.truncf %93 : vector<8x768xf32> to vector<8x768xbf16>
    %cst_48 = arith.constant dense<0.000000e+00> : vector<8x768xf32>
    %95 = tpu.matmul %92, %94, %cst_48 {dimension_numbers = #tpu.dot_dimension_numbers<[1], [0], [0], [1], [0, 0, 1, 1], [], []>} : vector<8x8xbf16>, vector<8x768xbf16>, vector<8x768xf32> -> vector<8x768xf32>
    %96 = arith.addf %90, %95 : vector<8x768xf32>
    %c8_49 = arith.constant 8 : index
    %c0_50 = arith.constant 0 : index
    %97 = vector.load %arg3[%c8_49, %c0_50] : memref<72x8xf32, #tpu.memory_space<vmem>>, vector<8x8xf32>
    %98 = arith.truncf %97 : vector<8x8xf32> to vector<8x8xbf16>
    %c0_51 = arith.constant 0 : index
    %c110_52 = arith.constant 110 : index
    %99 = vector.load %arg7[%c0_51, %c110_52] : memref<8x1024xf32, #tpu.memory_space<vmem>>, vector<8x768xf32>
    %100 = arith.truncf %99 : vector<8x768xf32> to vector<8x768xbf16>
    %cst_53 = arith.constant dense<0.000000e+00> : vector<8x768xf32>
    %101 = tpu.matmul %98, %100, %cst_53 {dimension_numbers = #tpu.dot_dimension_numbers<[1], [0], [0], [1], [0, 0, 1, 1], [], []>} : vector<8x8xbf16>, vector<8x768xbf16>, vector<8x768xf32> -> vector<8x768xf32>
    %102 = arith.addf %96, %101 : vector<8x768xf32>
    %c16_54 = arith.constant 16 : index
    %c0_55 = arith.constant 0 : index
    %103 = vector.load %arg3[%c16_54, %c0_55] : memref<72x8xf32, #tpu.memory_space<vmem>>, vector<8x8xf32>
    %104 = arith.truncf %103 : vector<8x8xf32> to vector<8x8xbf16>
    %c0_56 = arith.constant 0 : index
    %c111_57 = arith.constant 111 : index
    %105 = vector.load %arg7[%c0_56, %c111_57] : memref<8x1024xf32, #tpu.memory_space<vmem>>, vector<8x768xf32>
    %106 = arith.truncf %105 : vector<8x768xf32> to vector<8x768xbf16>
    %cst_58 = arith.constant dense<0.000000e+00> : vector<8x768xf32>
    %107 = tpu.matmul %104, %106, %cst_58 {dimension_numbers = #tpu.dot_dimension_numbers<[1], [0], [0], [1], [0, 0, 1, 1], [], []>} : vector<8x8xbf16>, vector<8x768xbf16>, vector<8x768xf32> -> vector<8x768xf32>
    %108 = arith.addf %102, %107 : vector<8x768xf32>
    %c24_59 = arith.constant 24 : index
    %c0_60 = arith.constant 0 : index
    %109 = vector.load %arg3[%c24_59, %c0_60] : memref<72x8xf32, #tpu.memory_space<vmem>>, vector<8x8xf32>
    %110 = arith.truncf %109 : vector<8x8xf32> to vector<8x8xbf16>
    %c0_61 = arith.constant 0 : index
    %c127_62 = arith.constant 127 : index
    %111 = vector.load %arg7[%c0_61, %c127_62] : memref<8x1024xf32, #tpu.memory_space<vmem>>, vector<8x768xf32>
    %112 = arith.truncf %111 : vector<8x768xf32> to vector<8x768xbf16>
    %cst_63 = arith.constant dense<0.000000e+00> : vector<8x768xf32>
    %113 = tpu.matmul %110, %112, %cst_63 {dimension_numbers = #tpu.dot_dimension_numbers<[1], [0], [0], [1], [0, 0, 1, 1], [], []>} : vector<8x8xbf16>, vector<8x768xbf16>, vector<8x768xf32> -> vector<8x768xf32>
    %114 = arith.addf %108, %113 : vector<8x768xf32>
    %c32_64 = arith.constant 32 : index
    %c0_65 = arith.constant 0 : index
    %115 = vector.load %arg3[%c32_64, %c0_65] : memref<72x8xf32, #tpu.memory_space<vmem>>, vector<8x8xf32>
    %116 = arith.truncf %115 : vector<8x8xf32> to vector<8x8xbf16>
    %c0_66 = arith.constant 0 : index
    %c128_67 = arith.constant 128 : index
    %117 = vector.load %arg7[%c0_66, %c128_67] : memref<8x1024xf32, #tpu.memory_space<vmem>>, vector<8x768xf32>
    %118 = arith.truncf %117 : vector<8x768xf32> to vector<8x768xbf16>
    %cst_68 = arith.constant dense<0.000000e+00> : vector<8x768xf32>
    %119 = tpu.matmul %116, %118, %cst_68 {dimension_numbers = #tpu.dot_dimension_numbers<[1], [0], [0], [1], [0, 0, 1, 1], [], []>} : vector<8x8xbf16>, vector<8x768xbf16>, vector<8x768xf32> -> vector<8x768xf32>
    %120 = arith.addf %114, %119 : vector<8x768xf32>
    %c40_69 = arith.constant 40 : index
    %c0_70 = arith.constant 0 : index
    %121 = vector.load %arg3[%c40_69, %c0_70] : memref<72x8xf32, #tpu.memory_space<vmem>>, vector<8x8xf32>
    %122 = arith.truncf %121 : vector<8x8xf32> to vector<8x8xbf16>
    %c0_71 = arith.constant 0 : index
    %c129_72 = arith.constant 129 : index
    %123 = vector.load %arg7[%c0_71, %c129_72] : memref<8x1024xf32, #tpu.memory_space<vmem>>, vector<8x768xf32>
    %124 = arith.truncf %123 : vector<8x768xf32> to vector<8x768xbf16>
    %cst_73 = arith.constant dense<0.000000e+00> : vector<8x768xf32>
    %125 = tpu.matmul %122, %124, %cst_73 {dimension_numbers = #tpu.dot_dimension_numbers<[1], [0], [0], [1], [0, 0, 1, 1], [], []>} : vector<8x8xbf16>, vector<8x768xbf16>, vector<8x768xf32> -> vector<8x768xf32>
    %126 = arith.addf %120, %125 : vector<8x768xf32>
    %c48_74 = arith.constant 48 : index
    %c0_75 = arith.constant 0 : index
    %127 = vector.load %arg3[%c48_74, %c0_75] : memref<72x8xf32, #tpu.memory_space<vmem>>, vector<8x8xf32>
    %128 = arith.truncf %127 : vector<8x8xf32> to vector<8x8xbf16>
    %c0_76 = arith.constant 0 : index
    %c145_77 = arith.constant 145 : index
    %129 = vector.load %arg7[%c0_76, %c145_77] : memref<8x1024xf32, #tpu.memory_space<vmem>>, vector<8x768xf32>
    %130 = arith.truncf %129 : vector<8x768xf32> to vector<8x768xbf16>
    %cst_78 = arith.constant dense<0.000000e+00> : vector<8x768xf32>
    %131 = tpu.matmul %128, %130, %cst_78 {dimension_numbers = #tpu.dot_dimension_numbers<[1], [0], [0], [1], [0, 0, 1, 1], [], []>} : vector<8x8xbf16>, vector<8x768xbf16>, vector<8x768xf32> -> vector<8x768xf32>
    %132 = arith.addf %126, %131 : vector<8x768xf32>
    %c56_79 = arith.constant 56 : index
    %c0_80 = arith.constant 0 : index
    %133 = vector.load %arg3[%c56_79, %c0_80] : memref<72x8xf32, #tpu.memory_space<vmem>>, vector<8x8xf32>
    %134 = arith.truncf %133 : vector<8x8xf32> to vector<8x8xbf16>
    %c0_81 = arith.constant 0 : index
    %c146_82 = arith.constant 146 : index
    %135 = vector.load %arg7[%c0_81, %c146_82] : memref<8x1024xf32, #tpu.memory_space<vmem>>, vector<8x768xf32>
    %136 = arith.truncf %135 : vector<8x768xf32> to vector<8x768xbf16>
    %cst_83 = arith.constant dense<0.000000e+00> : vector<8x768xf32>
    %137 = tpu.matmul %134, %136, %cst_83 {dimension_numbers = #tpu.dot_dimension_numbers<[1], [0], [0], [1], [0, 0, 1, 1], [], []>} : vector<8x8xbf16>, vector<8x768xbf16>, vector<8x768xf32> -> vector<8x768xf32>
    %138 = arith.addf %132, %137 : vector<8x768xf32>
    %c64_84 = arith.constant 64 : index
    %c0_85 = arith.constant 0 : index
    %139 = vector.load %arg3[%c64_84, %c0_85] : memref<72x8xf32, #tpu.memory_space<vmem>>, vector<8x8xf32>
    %140 = arith.truncf %139 : vector<8x8xf32> to vector<8x8xbf16>
    %c0_86 = arith.constant 0 : index
    %c147_87 = arith.constant 147 : index
    %141 = vector.load %arg7[%c0_86, %c147_87] : memref<8x1024xf32, #tpu.memory_space<vmem>>, vector<8x768xf32>
    %142 = arith.truncf %141 : vector<8x768xf32> to vector<8x768xbf16>
    %cst_88 = arith.constant dense<0.000000e+00> : vector<8x768xf32>
    %143 = tpu.matmul %140, %142, %cst_88 {dimension_numbers = #tpu.dot_dimension_numbers<[1], [0], [0], [1], [0, 0, 1, 1], [], []>} : vector<8x8xbf16>, vector<8x768xbf16>, vector<8x768xf32> -> vector<8x768xf32>
    %144 = arith.addf %138, %143 : vector<8x768xf32>
    %c0_89 = arith.constant 0 : index
    %c2 = arith.constant 2 : index
    %145 = vector.load %arg4[%c0_89, %c2] : memref<8x4xf32, #tpu.memory_space<vmem>>, vector<8x1xf32>
    %c0_90 = arith.constant 0 : index
    %c3 = arith.constant 3 : index
    %146 = vector.load %arg4[%c0_90, %c3] : memref<8x4xf32, #tpu.memory_space<vmem>>, vector<8x1xf32>
    %147 = vector.broadcast %0 : vector<1x768xf32> to vector<8x768xf32>
    %148 = arith.mulf %144, %147 : vector<8x768xf32>
    %cst_91 = arith.constant dense<0.000000e+00> : vector<8xf32>
    %149 = vector.multi_reduction <add>, %148, %cst_91 [1] : vector<8x768xf32> to vector<8xf32>
    %150 = vector.shape_cast %149 : vector<8xf32> to vector<8x1xf32>
    %151 = arith.mulf %144, %144 : vector<8x768xf32>
    %152 = vector.broadcast %0 : vector<1x768xf32> to vector<8x768xf32>
    %153 = arith.mulf %151, %152 : vector<8x768xf32>
    %cst_92 = arith.constant dense<0.000000e+00> : vector<8xf32>
    %154 = vector.multi_reduction <add>, %153, %cst_92 [1] : vector<8x768xf32> to vector<8xf32>
    %155 = vector.shape_cast %154 : vector<8xf32> to vector<8x1xf32>
    %cst_93 = arith.constant 0.001953125 : f32
    %156 = vector.broadcast %cst_93 : f32 to vector<8x1xf32>
    %157 = arith.mulf %150, %156 : vector<8x1xf32>
    %cst_94 = arith.constant 0.001953125 : f32
    %158 = vector.broadcast %cst_94 : f32 to vector<8x1xf32>
    %159 = arith.mulf %155, %158 : vector<8x1xf32>
    %160 = arith.mulf %157, %157 : vector<8x1xf32>
    %161 = arith.subf %159, %160 : vector<8x1xf32>
    %cst_95 = arith.constant 9.99999974E-6 : f32
    %162 = vector.broadcast %cst_95 : f32 to vector<8x1xf32>
    %163 = arith.addf %161, %162 : vector<8x1xf32>
    %164 = math.rsqrt %163 : vector<8x1xf32>
    %165 = arith.mulf %145, %164 : vector<8x1xf32>
    %166 = arith.mulf %157, %165 : vector<8x1xf32>
    %167 = arith.subf %146, %166 : vector<8x1xf32>
    %168 = vector.broadcast %165 : vector<8x1xf32> to vector<8x768xf32>
    %169 = arith.mulf %144, %168 : vector<8x768xf32>
    %170 = vector.broadcast %167 : vector<8x1xf32> to vector<8x768xf32>
    %171 = arith.addf %169, %170 : vector<8x768xf32>
    %c0_96 = arith.constant 0 : index
    %c128_97 = arith.constant 128 : index
    %172 = vector.load %arg1[%c0_96, %c128_97] : memref<8x1024xf32, #tpu.memory_space<vmem>>, vector<8x768xf32>
    %173 = arith.addf %171, %172 : vector<8x768xf32>
    %cst_98 = arith.constant 0.000000e+00 : f32
    %174 = vector.broadcast %cst_98 : f32 to vector<8x768xf32>
    %175 = arith.maximumf %173, %174 : vector<8x768xf32>
    %c0_99 = arith.constant 0 : index
    %c0_100 = arith.constant 0 : index
    %176 = vector.load %arg6[%c0_99, %c0_100] : memref<8x768xf32, #tpu.memory_space<vmem>>, vector<8x768xf32>
    tpu.vector_store %arg6[%c0_99, %c0_100], %175 {strides = array<i32>} : memref<8x768xf32, #tpu.memory_space<vmem>>, vector<8x768xf32>,
    return
  }
  func.func @transform_0(%arg0: i32) -> (i32, i32) {
    %c0_i32 = arith.constant 0 : i32
    %c0_i32_0 = arith.constant 0 : i32
    %c0_i32_1 = arith.constant 0 : i32
    return %c0_i32, %c0_i32_0 : i32, i32
  }
  func.func @transform_1(%arg0: i32) -> (i32, i32) {
    %c0_i32 = arith.constant 0 : i32
    %c0_i32_0 = arith.constant 0 : i32
    %c0_i32_1 = arith.constant 0 : i32
    return %c0_i32, %c0_i32_0 : i32, i32
  }
  func.func @transform_2(%arg0: i32) -> (i32, i32) {
    %c0_i32 = arith.constant 0 : i32
    %c0_i32_0 = arith.constant 0 : i32
    %c0_i32_1 = arith.constant 0 : i32
    return %c0_i32, %c0_i32_0 : i32, i32
  }
  func.func @transform_3(%arg0: i32) -> (i32, i32) {
    %c0_i32 = arith.constant 0 : i32
    %c0_i32_0 = arith.constant 0 : i32
    %c0_i32_1 = arith.constant 0 : i32
    return %c0_i32, %c0_i32_0 : i32, i32
  }
  func.func @transform_4(%arg0: i32) -> (i32, i32) {
    %c0_i32 = arith.constant 0 : i32
    %c0_i32_0 = arith.constant 0 : i32
    %c0_i32_1 = arith.constant 0 : i32
    return %c0_i32, %c0_i32_0 : i32, i32
  }
  func.func @transform_5(%arg0: i32) -> (i32, i32) {
    %c0_i32 = arith.constant 0 : i32
    %c0_i32_0 = arith.constant 0 : i32
    %c0_i32_1 = arith.constant 0 : i32
    return %c0_i32, %c0_i32_0 : i32, i32
  }
}

</mosaic_0001>

<bundles_post_ra>
// kernel: tile.6
= control target key start
LH: loop header
LB: loop body
LE: loop exit
PB: predicated region body
PF: predicated region fallthrough
CT: control target
= control target key end

     0   :  { %s46_s0 = inlined_call_operand.vmem [shape: f32[324], index: 0, kind: input, shape index: {}]   ;;  %s47_s1 = inlined_call_operand.vmem [shape: f32[2,324], index: 1, kind: output, shape index: {}]  }
   0x1   :  { %v4_v0 = vld [vmem:[%s46_s0] ss:$0 sm:$0xff]  ;;  %v14_v1 = vld [vmem:[%s46_s0 + $0x1] ss:$0 sm:$0xff]  ;;  %v16_v2 = vld [vmem:[%s46_s0 + $0x2] ss:$0 sm:$0xff] }
   0x2   :  { %5 = vst [vmem:[%s47_s1] sm:$0x3] %v4_v0  ;;  %15 = vst [vmem:[%s47_s1 + $0x2] sm:$0x3] %v14_v1 }
   0x3   :  { %17 = vst [vmem:[%s47_s1 + $0x4] sm:$0x3] %v16_v2 }

// kernel: tile.7
= control target key start
LH: loop header
LB: loop body
LE: loop exit
PB: predicated region body
PF: predicated region fallthrough
CT: control target
= control target key end

     0   :  { %vm27_vm0 = vcmask 490496   ;;  %vm17_vm1 = vcmask 556032   ;;  %s38_s12 = smov 3  ;;  %s53_s13 = smov 68   ;;  %vm31_vm2 = vcmask 64512   ;;  %vm34_vm3 = vcmask 1048096   ;;  %s90_s0 = inlined_call_operand.vmem [shape: f32[2,324], index: 0, kind: input, shape index: {}]   ;;  %s91_s1 = inlined_call_operand.vmem [shape: f32[648], index: 1, kind: output, shape index: {}]  }
   0x1   :  { %v46_v0 = vld [vmem:[%s90_s0 + $0x4] sm:$0x3]  ;;  %v47_v1 = vld [vmem:[%s90_s0 + $0x2] sm:$0x3]  ;;  %v13_v2 = vld [vmem:[%s90_s0] sm:$0x3] }
   0x2   :  { %8 = vst [vmem:[#allocation0 + $0x10] sm:$0x3] %v46_v0  ;;  %12 = vst [vmem:[#allocation0 + $0x8] sm:$0x3] %v47_v1  ;;  %s20_s0 = smov 3 }
   0x3   :  { %14 = vst [vmem:[#allocation0] sm:$0x3] %v13_v2 }
   0x9   :  { %v24_v3 = vld [vmem:[#allocation0 + $0x11] sm:$0x1]   ;;  %v16_v7 = vld [vmem:[#allocation0 + $0x10] sm:$0x1]  }
   0xa   :  { %v26_v4 = vld [vmem:[#allocation0 + $0x1] ss:$8 sm:$0x7]   ;;  %v21_v6 = vld [vmem:[#allocation0] ss:$8 sm:%s20_s0]  }
   0xb   :  { %v28_v5 = vsel %vm27_vm0, %v26_v4, %v24_v3  ;;  %22 = vst [vmem:[%s91_s1] sm:$0x3] %v21_v6   ;;  %48 = vst.msk [vmem:[%s91_s1 + $0x2] sm:$0x1] %vm17_vm1, %v16_v7   ;;  %v39_v8 = vld [vmem:[#allocation0 + $0x1] ss:$8 sm:%s38_s12]  }
   0xc   :  { %29 = vrot.lane.b32.xlu0 %v28_v5, %s53_s13 }
  0x10   :  { %40 = vrot.lane.b32.xlu0 %v39_v8, %s53_s13 }
  0x7e   :  { %v30_v9 = vpop.permute.xlu0 %29  }
  0x7f   :  { %49 = vst.msk [vmem:[%s91_s1 + $0x5] sm:$0x1] %vm31_vm2, %v30_v9  }
  0x80   :  { %50 = vst.msk [vmem:[%s91_s1 + $0x2] sm:$0x7] %vm34_vm3, %v30_v9  }
  0x82   :  { %v41_v10 = vpop.permute.xlu0 %40  }
  0x83   :  { %51 = vst.msk [vmem:[%s91_s1 + $0x3] sm:$0x3] %vm17_vm1, %v41_v10  }

// kernel: basic_block_forward.1
= control target key start
LH: loop header
LB: loop body
LE: loop exit
PB: predicated region body
PF: predicated region fallthrough
CT: control target
= control target key end

     0   :  { %v3690_v3 = vmov 0   ;;  %s3691_s26 = smov 18   ;;  %s3692_s8 = smov 19   ;;  %vm61_vm0 = vcmask 146432   ;;  %vm72_vm1 = vcmask 1043456   ;;  %vm68_vm2 = vcmask 64512   ;;  %s4486_s0 = inlined_call_operand.vmem [shape: f32[8,1024], index: 0, kind: input, shape index: {}]   ;;  %s4487_s1 = inlined_call_operand.vmem [shape: f32[72,8], index: 1, kind: input, shape index: {}]   ;;  %s4488_s4 = inlined_call_operand.vmem [shape: f32[1,768], index: 4, kind: input, shape index: {}]   ;;  %s4489_s3 = inlined_call_operand.vmem [shape: f32[8,4], index: 3, kind: input, shape index: {}]   ;;  %s4490_s2 = inlined_call_operand.vmem [shape: f32[72,8], index: 2, kind: input, shape index: {}]   ;;  %s4491_s5 = inlined_call_operand.vmem [shape: f32[8,768], index: 5, kind: output, shape index: {}]  }
   0x1   :  { %v26_v0 = vld [vmem:[%s4486_s0 + $0x10] sm:$0xff]  ;;  %v24_v1 = vld [vmem:[%s4486_s0] sm:$0xff]  ;;  %v27_v2 = vld [vmem:[%s4486_s0 + $0x18] sm:$0xff]  ;;  %123 = vmatprep.mubr.bf16.mxu0 %v3690_v3  ;;  %3682 = vset.pattern.permute.xlu1 %v3690_v3  ;;  %s3693_s9 = smov 17   ;;  %s3694_s10 = smov 1   ;;  %vm228_vm3 = vcmask 154624  }
   0x2   :  { %v3744_v4 = vpack.c.bf16 %v26_v0, %v26_v0  ;;  %v31_v5 = vpack.c.bf16 %v24_v1, %v24_v1  ;;  %v25_v6 = vld [vmem:[%s4486_s0 + $0x8] sm:$0xff]  ;;  %1813 = vmatprep.mubr.bf16.mxu1 %v3690_v3  ;;  %v3753_v7 = vpack.c.bf16 %v27_v2, %v27_v2  ;;  %v28_v10 = vld [vmem:[%s4486_s0 + $0x20] sm:$0xff]  ;;  %v30_v13 = vld [vmem:[%s4486_s0 + $0x30] sm:$0xff]  ;;  %s3695_s11 = smov 127   ;;  %s3696_s14 = smov 111   ;;  %vm395_vm4 = vcmask 138240  }
   0x3   :  { %v3755_v8 = vpack.c.bf16 %v25_v6, %v25_v6  ;;  %v29_v9 = vld [vmem:[%s4486_s0 + $0x28] sm:$0xff]  ;;  %v3769_v12 = vpack.c.bf16 %v28_v10, %v28_v10  ;;  %v3778_v14 = vpack.c.bf16 %v30_v13, %v30_v13  ;;  %v885_v15 = vld [vmem:[%s4486_s0 + $0x38] sm:$0xff]  ;;  %s3697_s15 = smov 110   ;;  %s3698_s16 = smov 109   ;;  %v22_v44 = vld [vmem:[%s4487_s1] sm:$0xff]  ;;  %vm568_vm5 = vcmask 7168  }
   0x4   :  { %51 = vrot.lane.b32.xlu1 %v3744_v4, %s3691_s26  ;;  %47 = vrot.lane.b32.xlu0 %v31_v5, %s3691_s26  ;;  %v3767_v11 = vpack.c.bf16 %v29_v9, %v29_v9  ;;  %v892_v16 = vpack.c.bf16 %v885_v15, %v885_v15  ;;  %v38_v19 = vld [vmem:[%s4487_s1 + $0x8] sm:$0xff]  ;;  %v23_v46 = vpack.c.bf16 %v22_v44, %v22_v44  ;;  %v379_v62 = vld [vmem:[%s4487_s1 + $0x10] sm:$0xff]  ;;  %vm914_vm6 = vcmask 1039360  }
   0x5   :  { %v39_v25 = vpack.c.bf16 %v38_v19, %v38_v19  ;;  %v380_v0 = vpack.c.bf16 %v379_v62, %v379_v62  ;;  %vm1087_vm7 = vcmask 908288   ;;  %vm1260_vm8 = vcmask 900096  }
   0x6   :  { %vm1433_vm9 = vcmask 891904  }
   0x8   :  { %53 = vrot.lane.b32.xlu1 %v3753_v7, %s3691_s26  ;;  %49 = vrot.lane.b32.xlu0 %v3755_v8, %s3691_s26 }
   0xc   :  { %57 = vrot.lane.b32.xlu1 %v3767_v11, %s3691_s26  ;;  %55 = vrot.lane.b32.xlu0 %v3769_v12, %s3691_s26 }
  0x10   :  { %59 = vrot.lane.b32.xlu0 %v3778_v14, %s3691_s26  ;;  %214 = vrot.lane.b32.xlu1 %v31_v5, %s3692_s8 }
  0x14   :  { %216 = vrot.lane.b32.xlu0 %v3755_v8, %s3692_s8  ;;  %218 = vrot.lane.b32.xlu1 %v3744_v4, %s3692_s8 }
  0x18   :  { %220 = vrot.lane.b32.xlu0 %v3753_v7, %s3692_s8  ;;  %222 = vrot.lane.b32.xlu1 %v3769_v12, %s3692_s8 }
  0x1c   :  { %224 = vrot.lane.b32.xlu0 %v3767_v11, %s3692_s8  ;;  %226 = vrot.lane.b32.xlu1 %v3778_v14, %s3692_s8 }
  0x20   :  { %381 = vrot.lane.b32.xlu0 %v31_v5, %s3693_s9  ;;  %383 = vrot.lane.b32.xlu1 %v3755_v8, %s3693_s9 }
  0x24   :  { %385 = vrot.lane.b32.xlu0 %v3744_v4, %s3693_s9  ;;  %387 = vrot.lane.b32.xlu1 %v3753_v7, %s3693_s9 }
  0x28   :  { %389 = vrot.lane.b32.xlu0 %v3769_v12, %s3693_s9  ;;  %391 = vrot.lane.b32.xlu1 %v3767_v11, %s3693_s9 }
  0x2c   :  { %393 = vrot.lane.b32.xlu0 %v3778_v14, %s3693_s9  ;;  %554 = vrot.lane.b32.xlu1 %v31_v5, %s3694_s10 }
  0x30   :  { %556 = vrot.lane.b32.xlu0 %v3755_v8, %s3694_s10  ;;  %558 = vrot.lane.b32.xlu1 %v3744_v4, %s3694_s10 }
  0x34   :  { %560 = vrot.lane.b32.xlu0 %v3753_v7, %s3694_s10  ;;  %562 = vrot.lane.b32.xlu1 %v3769_v12, %s3694_s10 }
  0x38   :  { %564 = vrot.lane.b32.xlu0 %v3767_v11, %s3694_s10  ;;  %566 = vrot.lane.b32.xlu1 %v3778_v14, %s3694_s10 }
  0x3c   :  { %900 = vrot.lane.b32.xlu0 %v3755_v8, %s3695_s11  ;;  %902 = vrot.lane.b32.xlu1 %v3744_v4, %s3695_s11 }
  0x40   :  { %904 = vrot.lane.b32.xlu0 %v3753_v7, %s3695_s11  ;;  %906 = vrot.lane.b32.xlu1 %v3769_v12, %s3695_s11 }
  0x44   :  { %908 = vrot.lane.b32.xlu0 %v3767_v11, %s3695_s11  ;;  %910 = vrot.lane.b32.xlu1 %v3778_v14, %s3695_s11 }
  0x48   :  { %912 = vrot.lane.b32.xlu0 %v892_v16, %s3695_s11  ;;  %1073 = vrot.lane.b32.xlu1 %v3755_v8, %s3696_s14 }
  0x4c   :  { %1075 = vrot.lane.b32.xlu0 %v3744_v4, %s3696_s14  ;;  %1077 = vrot.lane.b32.xlu1 %v3753_v7, %s3696_s14 }
  0x50   :  { %1079 = vrot.lane.b32.xlu0 %v3769_v12, %s3696_s14  ;;  %1081 = vrot.lane.b32.xlu1 %v3767_v11, %s3696_s14 }
  0x54   :  { %1083 = vrot.lane.b32.xlu0 %v3778_v14, %s3696_s14  ;;  %1085 = vrot.lane.b32.xlu1 %v892_v16, %s3696_s14 }
  0x58   :  { %1246 = vrot.lane.b32.xlu0 %v3755_v8, %s3697_s15  ;;  %1248 = vrot.lane.b32.xlu1 %v3744_v4, %s3697_s15 }
  0x5c   :  { %1250 = vrot.lane.b32.xlu0 %v3753_v7, %s3697_s15  ;;  %1252 = vrot.lane.b32.xlu1 %v3769_v12, %s3697_s15 }
  0x60   :  { %1254 = vrot.lane.b32.xlu0 %v3767_v11, %s3697_s15  ;;  %1256 = vrot.lane.b32.xlu1 %v3778_v14, %s3697_s15 }
  0x64   :  { %1258 = vrot.lane.b32.xlu0 %v892_v16, %s3697_s15  ;;  %1419 = vrot.lane.b32.xlu1 %v3755_v8, %s3698_s16 }
  0x68   :  { %1421 = vrot.lane.b32.xlu0 %v3744_v4, %s3698_s16  ;;  %1423 = vrot.lane.b32.xlu1 %v3753_v7, %s3698_s16 }
  0x6c   :  { %1425 = vrot.lane.b32.xlu0 %v3769_v12, %s3698_s16  ;;  %1427 = vrot.lane.b32.xlu1 %v3767_v11, %s3698_s16 }
  0x70   :  { %1429 = vrot.lane.b32.xlu0 %v3778_v14, %s3698_s16  ;;  %1431 = vrot.lane.b32.xlu1 %v892_v16, %s3698_s16 }
  0x76   :  { %v52_v17 = vpop.permute.xlu1 %51  ;;  %v48_v18 = vpop.permute.xlu0 %47 }
  0x7a   :  { %v54_v20 = vpop.permute.xlu1 %53  ;;  %v50_v21 = vpop.permute.xlu0 %49 }
  0x7b   :  { %v63_v22 = vsel %vm61_vm0, %v50_v21, %v52_v17  ;;  %v62_v23 = vsel %vm61_vm0, %v48_v18, %v50_v21  ;;  %v64_v26 = vsel %vm61_vm0, %v52_v17, %v54_v20 }
  0x7c   :  { %3369 = vmatprep.subr.msk.bf16.mxu0 %vm72_vm1, %v63_v22  ;;  %v74_v24 = vsel %vm72_vm1, %v62_v23, 0  ;;  %v80_v30 = vsel %vm72_vm1, %v64_v26, 0  ;;  %v552_v23 = vld [vmem:[%s4487_s1 + $0x18] sm:$0xff] }
  0x7d   :  { %92 = vmatpush1.bf16.msra.mxu0 %v74_v24  ;;  %v553_v24 = vpack.c.bf16 %v552_v23, %v552_v23 }
  0x7e   :  { %v58_v27 = vpop.permute.xlu1 %57  ;;  %v56_v28 = vpop.permute.xlu0 %55 }
  0x7f   :  { %v65_v29 = vsel %vm61_vm0, %v54_v20, %v56_v28  ;;  %v66_v34 = vsel %vm61_vm0, %v56_v28, %v58_v27 }
  0x80   :  { %3370 = vmatmul.mubr.msk.bf16.vlgmr.msra.gmra.mrb[0].mxu0 %vm68_vm2, %v39_v25  ;;  %3371 = vmatprep.subr.msk.bf16.mxu0 %vm72_vm1, %v65_v29  ;;  %v86_v38 = vsel %vm72_vm1, %v66_v34, 0 }
  0x81   :  { %133 = vmatpush1.bf16.msra.mxu0 %v80_v30  ;;  %164 = vmatprep.mubr.bf16.mxu0 %v3690_v3 }
  0x82   :  { %v60_v31 = vpop.permute.xlu0 %59  ;;  %v215_v32 = vpop.permute.xlu1 %214 }
  0x83   :  { %v67_v33 = vsel %vm61_vm0, %v58_v27, %v60_v31 }
  0x84   :  { %3373 = vmatprep.subr.msk.bf16.mxu0 %vm72_vm1, %v67_v33  ;;  %v725_v33 = vld [vmem:[%s4487_s1 + $0x20] sm:$0xff] }
  0x85   :  { %v726_v34 = vpack.c.bf16 %v725_v33, %v725_v33 }
  0x86   :  { %v217_v35 = vpop.permute.xlu0 %216  ;;  %v219_v36 = vpop.permute.xlu1 %218 }
  0x87   :  { %v230_v37 = vsel %vm228_vm3, %v217_v35, %v219_v36  ;;  %v229_v39 = vsel %vm228_vm3, %v215_v32, %v217_v35  ;;  %v731_v32 = vsel %vm72_vm1, %v3755_v8, 0  ;;  %v737_v35 = vsel %vm72_vm1, %v3753_v7, 0 }
  0x88   :  { %3372 = vmatmul.mubr.msk.bf16.vlgmr.msra.gmra.mrb[4].mxu0 %vm68_vm2, %v39_v25  ;;  %v239_v42 = vsel %vm72_vm1, %v229_v39, 0 }
  0x89   :  { %174 = vmatpush1.bf16.msra.mxu0 %v86_v38  ;;  %205 = vmatprep.mubr.bf16.mxu0 %v3690_v3 }
  0x8a   :  { %3375 = vmatprep.subr.msk.bf16.mxu0 %vm72_vm1, %v230_v37  ;;  %v223_v40 = vpop.permute.xlu1 %222  ;;  %v221_v41 = vpop.permute.xlu0 %220  ;;  %v743_v37 = vsel %vm72_vm1, %v3767_v11, 0  ;;  %v877_v11 = vld [vmem:[%s4487_s1 + $0x28] sm:$0xff] }
  0x8b   :  { %v232_v43 = vsel %vm228_vm3, %v221_v41, %v223_v40  ;;  %v231_v48 = vsel %vm228_vm3, %v219_v36, %v221_v41 }
  0x8c   :  { %v245_v51 = vsel %vm72_vm1, %v231_v48, 0 }
  0x8e   :  { %v225_v45 = vpop.permute.xlu0 %224  ;;  %v227_v47 = vpop.permute.xlu1 %226 }
  0x8f   :  { %v234_v50 = vsel %vm228_vm3, %v225_v45, %v227_v47  ;;  %v233_v54 = vsel %vm228_vm3, %v223_v40, %v225_v45 }
  0x90   :  { %3374 = vmatmul.mubr.msk.bf16.vlgmr.msra.gmra.mrb[8].mxu0 %vm68_vm2, %v39_v25  ;;  %v251_v56 = vsel %vm72_vm1, %v233_v54, 0 }
  0x91   :  { %257 = vmatpush1.bf16.msra.mxu0 %v239_v42  ;;  %288 = vmatprep.mubr.bf16.mxu0 %v3690_v3  ;;  %v878_v42 = vpack.c.bf16 %v877_v11, %v877_v11  ;;  %v1592_v11 = vlaneseq }
  0x92   :  { %3377 = vmatprep.subr.msk.bf16.mxu0 %vm72_vm1, %v232_v43  ;;  %v382_v49 = vpop.permute.xlu0 %381  ;;  %v384_v52 = vpop.permute.xlu1 %383 }
  0x93   :  { %v396_v57 = vsel %vm395_vm4, %v382_v49, %v384_v52 }
  0x94   :  { %v406_v60 = vsel %vm72_vm1, %v396_v57, 0 }
  0x96   :  { %v386_v53 = vpop.permute.xlu0 %385  ;;  %v388_v59 = vpop.permute.xlu1 %387 }
  0x97   :  { %v397_v55 = vsel %vm395_vm4, %v384_v52, %v386_v53  ;;  %v398_v2 = vsel %vm395_vm4, %v386_v53, %v388_v59 }
  0x98   :  { %3376 = vmatmul.mubr.msk.bf16.vlgmr.msra.gmra.mrb[0].mxu0 %vm68_vm2, %v23_v46  ;;  %v412_v9 = vsel %vm72_vm1, %v398_v2, 0 }
  0x99   :  { %298 = vmatpush1.bf16.msra.mxu0 %v245_v51  ;;  %329 = vmatprep.mubr.bf16.mxu0 %v3690_v3 }
  0x9a   :  { %3379 = vmatprep.subr.msk.bf16.mxu0 %vm72_vm1, %v234_v50  ;;  %v390_v58 = vpop.permute.xlu0 %389  ;;  %v392_v63 = vpop.permute.xlu1 %391 }
  0x9b   :  { %v399_v61 = vsel %vm395_vm4, %v388_v59, %v390_v58  ;;  %v400_v15 = vsel %vm395_vm4, %v390_v58, %v392_v63  ;;  %v1071_v58 = vld [vmem:[%s4487_s1 + $0x30] sm:$0xff] }
  0x9c   :  { %v418_v17 = vsel %vm72_vm1, %v400_v15, 0 }
  0x9e   :  { %v394_v1 = vpop.permute.xlu0 %393  ;;  %v555_v5 = vpop.permute.xlu1 %554 }
  0x9f   :  { %v401_v6 = vsel %vm395_vm4, %v392_v63, %v394_v1 }
  0xa0   :  { %3378 = vmatmul.mubr.msk.bf16.vlgmr.msra.gmra.mrb[4].mxu0 %vm68_vm2, %v23_v46 }
  0xa1   :  { %339 = vmatpush1.bf16.msra.mxu0 %v251_v56  ;;  %370 = vmatprep.mubr.bf16.mxu0 %v3690_v3 }
  0xa2   :  { %3381 = vmatprep.subr.msk.bf16.mxu0 %vm72_vm1, %v397_v55  ;;  %v557_v10 = vpop.permute.xlu0 %556  ;;  %v559_v13 = vpop.permute.xlu1 %558 }
  0xa3   :  { %v570_v16 = vsel %vm568_vm5, %v557_v10, %v559_v13  ;;  %v569_v18 = vsel %vm568_vm5, %v555_v5, %v557_v10 }
  0xa4   :  { %v579_v21 = vsel %vm72_vm1, %v569_v18, 0 }
  0xa6   :  { %v563_v19 = vpop.permute.xlu1 %562  ;;  %v561_v20 = vpop.permute.xlu0 %560 }
  0xa7   :  { %v572_v22 = vsel %vm568_vm5, %v561_v20, %v563_v19  ;;  %v571_v26 = vsel %vm568_vm5, %v559_v13, %v561_v20 }
  0xa8   :  { %3380 = vmatmul.mubr.msk.bf16.vlgmr.msra.gmra.mrb[8].mxu0 %vm68_vm2, %v23_v46  ;;  %v585_v29 = vsel %vm72_vm1, %v571_v26, 0 }
  0xa9   :  { %424 = vmatpush1.bf16.msra.mxu0 %v406_v60  ;;  %455 = vmatprep.mubr.bf16.mxu0 %v3690_v3  ;;  %v1072_v60 = vpack.c.bf16 %v1071_v58, %v1071_v58 }
  0xaa   :  { %3383 = vmatprep.subr.msk.bf16.mxu0 %vm72_vm1, %v399_v61  ;;  %v567_v25 = vpop.permute.xlu1 %566  ;;  %v565_v27 = vpop.permute.xlu0 %564 }
  0xab   :  { %v574_v28 = vsel %vm568_vm5, %v565_v27, %v567_v25  ;;  %v573_v30 = vsel %vm568_vm5, %v563_v19, %v565_v27  ;;  %v1244_v19 = vld [vmem:[%s4487_s1 + $0x38] sm:$0xff] }
  0xac   :  { %v591_v31 = vsel %vm72_vm1, %v573_v30, 0 }
  0xae   :  { %v903_v8 = vpop.permute.xlu1 %902 }
  0xb0   :  { %3382 = vmatmul.mubr.msk.bf16.vlgmr.msra.gmra.mrb[0].mxu0 %vm68_vm2, %v380_v0 }
  0xb1   :  { %465 = vmatpush1.bf16.msra.mxu0 %v412_v9  ;;  %496 = vmatprep.mubr.bf16.mxu0 %v3690_v3 }
  0xb2   :  { %3385 = vmatprep.subr.msk.bf16.mxu0 %vm72_vm1, %v401_v6  ;;  %v907_v39 = vpop.permute.xlu1 %906 }
  0xb6   :  { %v911_v41 = vpop.permute.xlu1 %910 }
  0xb8   :  { %3384 = vmatmul.mubr.msk.bf16.vlgmr.msra.gmra.mrb[4].mxu0 %vm68_vm2, %v380_v0 }
  0xb9   :  { %506 = vmatpush1.bf16.msra.mxu0 %v418_v17  ;;  %537 = vmatprep.mubr.bf16.mxu0 %v3690_v3 }
  0xba   :  { %3387 = vmatprep.subr.msk.bf16.mxu0 %vm72_vm1, %v570_v16  ;;  %v1074_v45 = vpop.permute.xlu1 %1073 }
  0xbe   :  { %v1078_v49 = vpop.permute.xlu1 %1077 }
  0xc0   :  { %3386 = vmatmul.mubr.msk.bf16.vlgmr.msra.gmra.mrb[8].mxu0 %vm68_vm2, %v380_v0 }
  0xc1   :  { %597 = vmatpush1.bf16.msra.mxu0 %v579_v21  ;;  %628 = vmatprep.mubr.bf16.mxu0 %v3690_v3  ;;  %v1245_v21 = vpack.c.bf16 %v1244_v19, %v1244_v19 }
  0xc2   :  { %3389 = vmatprep.subr.msk.bf16.mxu0 %vm72_vm1, %v572_v22  ;;  %v1082_v54 = vpop.permute.xlu1 %1081 }
  0xc6   :  { %v1086_v61 = vpop.permute.xlu1 %1085 }
  0xc8   :  { %3388 = vmatmul.mubr.msk.bf16.vlgmr.msra.gmra.mrb[0].mxu0 %vm68_vm2, %v553_v24 }
  0xc9   :  { %638 = vmatpush1.bf16.msra.mxu0 %v585_v29  ;;  %669 = vmatprep.mubr.bf16.mxu0 %v3690_v3 }
  0xca   :  { %3391 = vmatprep.subr.msk.bf16.mxu0 %vm72_vm1, %v574_v28  ;;  %v1249_v2 = vpop.permute.xlu1 %1248 }
  0xce   :  { %v1253_v17 = vpop.permute.xlu1 %1252 }
  0xd0   :  { %3390 = vmatmul.mubr.msk.bf16.vlgmr.msra.gmra.mrb[4].mxu0 %vm68_vm2, %v553_v24 }
  0xd1   :  { %679 = vmatpush1.bf16.msra.mxu0 %v591_v31  ;;  %710 = vmatprep.mubr.bf16.mxu0 %v3690_v3 }
  0xd2   :  { %3393 = vmatprep.subr.msk.bf16.mxu0 %vm72_vm1, %v3744_v4  ;;  %v901_v4 = vpop.permute.xlu0 %900  ;;  %v1257_v20 = vpop.permute.xlu1 %1256 }
  0xd3   :  { %v915_v7 = vsel %vm914_vm6, %v901_v4, %v903_v8 }
  0xd6   :  { %v905_v36 = vpop.permute.xlu0 %904 }
  0xd7   :  { %v917_v44 = vsel %vm914_vm6, %v905_v36, %v907_v39 }
  0xd8   :  { %3392 = vmatmul.mubr.msk.bf16.vlgmr.msra.gmra.mrb[8].mxu0 %vm68_vm2, %v553_v24  ;;  %v931_v47 = vsel %vm72_vm1, %v917_v44, 0  ;;  %v1420_v24 = vpop.permute.xlu1 %1419 }
  0xd9   :  { %749 = vmatpush1.bf16.msra.mxu0 %v731_v32  ;;  %780 = vmatprep.mubr.bf16.mxu0 %v3690_v3 }
  0xda   :  { %3395 = vmatprep.subr.msk.bf16.mxu0 %vm72_vm1, %v3769_v12  ;;  %v916_v12 = vsel %vm914_vm6, %v903_v8, %v905_v36  ;;  %v909_v38 = vpop.permute.xlu0 %908  ;;  %v1417_v8 = vld [vmem:[%s4487_s1 + $0x40] sm:$0xff] }
  0xdb   :  { %v918_v40 = vsel %vm914_vm6, %v907_v39, %v909_v38  ;;  %v919_v50 = vsel %vm914_vm6, %v909_v38, %v911_v41  ;;  %v1418_v36 = vpack.c.bf16 %v1417_v8, %v1417_v8 }
  0xdc   :  { %v937_v52 = vsel %vm72_vm1, %v919_v50, 0  ;;  %v1424_v28 = vpop.permute.xlu1 %1423 }
  0xde   :  { %v913_v43 = vpop.permute.xlu0 %912 }
  0xdf   :  { %v920_v46 = vsel %vm914_vm6, %v911_v41, %v913_v43  ;;  %v1593_v41 = vshrl.u32 %v1592_v11, 7  ;;  %v21_v43 = vld [vmem:[%s4488_s4] sm:$0x3f] }
  0xe0   :  { %3394 = vmatmul.mubr.msk.bf16.vlgmr.msra.gmra.mrb[0].mxu0 %vm68_vm2, %v726_v34  ;;  %v1428_v33 = vpop.permute.xlu1 %1427  ;;  %v4104_v11 = vld [vmem:[%s4489_s3] sm:$0xff] }
  0xe1   :  { %790 = vmatpush1.bf16.msra.mxu0 %v737_v35  ;;  %821 = vmatprep.mubr.bf16.mxu0 %v3690_v3  ;;  %v1598_v44 = vsub.s32 1, %v1593_v41 }
  0xe2   :  { %3397 = vmatprep.subr.msk.bf16.mxu0 %vm72_vm1, %v3778_v14  ;;  %v925_v14 = vsel %vm72_vm1, %v915_v7, 0  ;;  %v1076_v48 = vpop.permute.xlu0 %1075 }
  0xe3   :  { %v1089_v51 = vsel %vm1087_vm7, %v1076_v48, %v1078_v49  ;;  %v1088_v53 = vsel %vm1087_vm7, %v1074_v45, %v1076_v48 }
  0xe4   :  { %v1098_v55 = vsel %vm72_vm1, %v1088_v53, 0 }
  0xe6   :  { %v1080_v56 = vpop.permute.xlu0 %1079 }
  0xe7   :  { %v1091_v57 = vsel %vm1087_vm7, %v1080_v56, %v1082_v54  ;;  %v1090_v62 = vsel %vm1087_vm7, %v1078_v49, %v1080_v56 }
  0xe8   :  { %3396 = vmatmul.mubr.msk.bf16.vlgmr.msra.gmra.mrb[4].mxu0 %vm68_vm2, %v726_v34  ;;  %v1104_v1 = vsel %vm72_vm1, %v1090_v62, 0 }
  0xe9   :  { %831 = vmatpush1.bf16.msra.mxu0 %v743_v37  ;;  %862 = vmatprep.mubr.bf16.mxu0 %v3690_v3  ;;  %v1432_v37 = vpop.permute.xlu1 %1431 }
  0xea   :  { %3399 = vmatprep.subr.msk.bf16.mxu0 %vm72_vm1, %v916_v12  ;;  %v1084_v59 = vpop.permute.xlu0 %1083 }
  0xeb   :  { %v1093_v0 = vsel %vm1087_vm7, %v1084_v59, %v1086_v61  ;;  %v1092_v6 = vsel %vm1087_vm7, %v1082_v54, %v1084_v59 }
  0xec   :  { %v1110_v10 = vsel %vm72_vm1, %v1092_v6, 0 }
  0xee   :  { %v1247_v63 = vpop.permute.xlu0 %1246 }
  0xef   :  { %v1261_v13 = vsel %vm1260_vm8, %v1247_v63, %v1249_v2 }
  0xf0   :  { %3398 = vmatmul.mubr.msk.bf16.vlgmr.msra.gmra.mrb[8].mxu0 %vm68_vm2, %v726_v34  ;;  %v1271_v16 = vsel %vm72_vm1, %v1261_v13, 0  ;;  %v1614_v13 = vsub.s32 5, %v1593_v41 }
  0xf1   :  { %943 = vmatpush1.bf16.msra.mxu0 %v925_v14  ;;  %974 = vmatprep.mubr.bf16.mxu0 %v3690_v3 }
  0xf2   :  { %3401 = vmatprep.subr.msk.bf16.mxu0 %vm72_vm1, %v918_v40  ;;  %v1251_v5 = vpop.permute.xlu0 %1250 }
  0xf3   :  { %v1262_v9 = vsel %vm1260_vm8, %v1249_v2, %v1251_v5  ;;  %v1263_v23 = vsel %vm1260_vm8, %v1251_v5, %v1253_v17  ;;  %v1610_v5 = vsub.s32 4, %v1593_v41 }
  0xf4   :  { %v1277_v26 = vsel %vm72_vm1, %v1263_v23, 0 }
  0xf5   :  { %v4093_v19 = vrot.slane %v21_v43, %v1610_v5 }
  0xf6   :  { %v1255_v15 = vpop.permute.xlu0 %1254 }
  0xf7   :  { %v1264_v18 = vsel %vm1260_vm8, %v1253_v17, %v1255_v15  ;;  %v1265_v29 = vsel %vm1260_vm8, %v1255_v15, %v1257_v20 }
  0xf8   :  { %3400 = vmatmul.mubr.msk.bf16.vlgmr.msra.gmra.mrb[0].mxu0 %vm68_vm2, %v878_v42  ;;  %v1283_v31 = vsel %vm72_vm1, %v1265_v29, 0 }
  0xf9   :  { %984 = vmatpush1.bf16.msra.mxu0 %v931_v47  ;;  %1015 = vmatprep.mubr.bf16.mxu0 %v3690_v3 }
  0xfa   :  { %3403 = vmatprep.subr.msk.bf16.mxu0 %vm72_vm1, %v920_v46  ;;  %v1259_v22 = vpop.permute.xlu0 %1258  ;;  %v4069_v46 = vrot.slane %v21_v43, %v1598_v44 }
  0xfb   :  { %v1266_v25 = vsel %vm1260_vm8, %v1257_v20, %v1259_v22  ;;  %v4095_v22 = vrot.slane %v21_v43, %v1614_v13 }
  0xfe   :  { %v1422_v27 = vpop.permute.xlu0 %1421 }
  0xff   :  { %v1435_v30 = vsel %vm1433_vm9, %v1422_v27, %v1424_v28  ;;  %v1434_v32 = vsel %vm1433_vm9, %v1420_v24, %v1422_v27 }
 0x100   :  { %3402 = vmatmul.mubr.msk.bf16.vlgmr.msra.gmra.mrb[4].mxu0 %vm68_vm2, %v878_v42  ;;  %v1444_v34 = vsel %vm72_vm1, %v1434_v32, 0 }
 0x101   :  { %1025 = vmatpush1.bf16.msra.mxu0 %v937_v52  ;;  %1056 = vmatprep.mubr.bf16.mxu0 %v3690_v3 }
 0x102   :  { %3405 = vmatprep.subr.msk.bf16.mxu0 %vm72_vm1, %v1089_v51  ;;  %v1426_v35 = vpop.permute.xlu0 %1425  ;;  %v1602_v51 = vsub.s32 2, %v1593_v41 }
 0x103   :  { %v1437_v4 = vsel %vm1433_vm9, %v1426_v35, %v1428_v33  ;;  %v1436_v12 = vsel %vm1433_vm9, %v1424_v28, %v1426_v35 }
 0x104   :  { %v1450_v14 = vsel %vm72_vm1, %v1436_v12, 0 }
 0x106   :  { %v1430_v7 = vpop.permute.xlu0 %1429 }
 0x107   :  { %v1439_v38 = vsel %vm1433_vm9, %v1430_v7, %v1432_v37  ;;  %v1438_v39 = vsel %vm1433_vm9, %v1428_v33, %v1430_v7 }
 0x108   :  { %3404 = vmatmul.mubr.msk.bf16.vlgmr.msra.gmra.mrb[8].mxu0 %vm68_vm2, %v878_v42  ;;  %v1456_v40 = vsel %vm72_vm1, %v1438_v39, 0  ;;  %v1594_v42 = vsub.s32 0, %v1593_v41 }
 0x109   :  { %1116 = vmatpush1.bf16.msra.mxu0 %v1098_v55  ;;  %1147 = vmatprep.mubr.bf16.mxu0 %v3690_v3  ;;  %v1606_v55 = vsub.s32 3, %v1593_v41 }
 0x10a   :  { %3407 = vmatprep.subr.msk.bf16.mxu0 %vm72_vm1, %v1091_v57  ;;  %v4067_v45 = vrot.slane %v21_v43, %v1594_v42 }
 0x10b   :  { %v4087_v62 = vrot.slane %v21_v43, %v1606_v55 }
 0x110   :  { %3406 = vmatmul.mubr.msk.bf16.vlgmr.msra.gmra.mrb[0].mxu0 %vm68_vm2, %v1072_v60 }
 0x111   :  { %1157 = vmatpush1.bf16.msra.mxu0 %v1104_v1  ;;  %1188 = vmatprep.mubr.bf16.mxu0 %v3690_v3 }
 0x112   :  { %3409 = vmatprep.subr.msk.bf16.mxu0 %vm72_vm1, %v1093_v0 }
 0x118   :  { %3408 = vmatmul.mubr.msk.bf16.vlgmr.msra.gmra.mrb[4].mxu0 %vm68_vm2, %v1072_v60 }
 0x119   :  { %1198 = vmatpush1.bf16.msra.mxu0 %v1110_v10  ;;  %1229 = vmatprep.mubr.bf16.mxu0 %v3690_v3 }
 0x11a   :  { %3411 = vmatprep.subr.msk.bf16.mxu0 %vm72_vm1, %v1262_v9 }
 0x120   :  { %3410 = vmatmul.mubr.msk.bf16.vlgmr.msra.gmra.mrb[8].mxu0 %vm68_vm2, %v1072_v60  ;;  %v4085_v60 = vrot.slane %v21_v43, %v1602_v51 }
 0x121   :  { %1289 = vmatpush1.bf16.msra.mxu0 %v1271_v16  ;;  %1320 = vmatprep.mubr.bf16.mxu0 %v3690_v3 }
 0x122   :  { %3413 = vmatprep.subr.msk.bf16.mxu0 %vm72_vm1, %v1264_v18 }
 0x128   :  { %3412 = vmatmul.mubr.msk.bf16.vlgmr.msra.gmra.mrb[0].mxu0 %vm68_vm2, %v1245_v21 }
 0x129   :  { %1330 = vmatpush1.bf16.msra.mxu0 %v1277_v26  ;;  %1361 = vmatprep.mubr.bf16.mxu0 %v3690_v3 }
 0x12a   :  { %3415 = vmatprep.subr.msk.bf16.mxu0 %vm72_vm1, %v1266_v25 }
 0x130   :  { %3414 = vmatmul.mubr.msk.bf16.vlgmr.msra.gmra.mrb[4].mxu0 %vm68_vm2, %v1245_v21 }
 0x131   :  { %1371 = vmatpush1.bf16.msra.mxu0 %v1283_v31  ;;  %1402 = vmatprep.mubr.bf16.mxu0 %v3690_v3 }
 0x132   :  { %3417 = vmatprep.subr.msk.bf16.mxu0 %vm72_vm1, %v1435_v30 }
 0x138   :  { %3416 = vmatmul.mubr.msk.bf16.vlgmr.msra.gmra.mrb[8].mxu0 %vm68_vm2, %v1245_v21 }
 0x139   :  { %1462 = vmatpush1.bf16.msra.mxu0 %v1444_v34  ;;  %1493 = vmatprep.mubr.bf16.mxu0 %v3690_v3 }
 0x13a   :  { %3419 = vmatprep.subr.msk.bf16.mxu0 %vm72_vm1, %v1437_v4 }
 0x140   :  { %3418 = vmatmul.mubr.msk.bf16.vlgmr.msra.gmra.mrb[0].mxu0 %vm68_vm2, %v1418_v36 }
 0x141   :  { %1503 = vmatpush1.bf16.msra.mxu0 %v1450_v14  ;;  %1534 = vmatprep.mubr.bf16.mxu0 %v3690_v3 }
 0x142   :  { %3421 = vmatprep.subr.msk.bf16.mxu0 %vm72_vm1, %v1439_v38 }
 0x148   :  { %3420 = vmatmul.mubr.msk.bf16.vlgmr.msra.gmra.mrb[4].mxu0 %vm68_vm2, %v1418_v36 }
 0x149   :  { %1544 = vmatpush1.bf16.msra.mxu0 %v1456_v40  ;;  %1575 = vmatprep.mubr.bf16.mxu0 %v3690_v3  ;;  %v3699_v40 = vmov 1  }
 0x14a   :  { %3683 = vset.pattern.permute.xlu0 %v3699_v40 }
 0x150   :  { %3422 = vmatmul.mubr.msk.bf16.vlgmr.msra.gmra.mrb[8].mxu0 %vm68_vm2, %v1418_v36 }
 0x213   :  { %v4071_v47 = vpop.f32.mrb[0].mxu0 }
 0x214   :  { %v1622_v48 = vmul.f32 %v4067_v45, %v4071_v47  ;;  %v1635_v49 = vmul.f32 %v4071_v47, %v4071_v47  ;;  %v4077_v50 = vpop.f32.mrb[1].mxu0 }
 0x215   :  { %v1623_v52 = vmul.f32 %v4069_v46, %v4077_v50  ;;  %v1636_v53 = vmul.f32 %v4077_v50, %v4077_v50  ;;  %v1499_v54 = vpop.f32.mrb[2].mxu0 }
 0x216   :  { %v1641_v56 = vmul.f32 %v1635_v49, %v4067_v45  ;;  %v1500_v57 = vpop.f32.mrb[3].mxu0  ;;  %v3700_v49 = vmov 0.0|0.0  }
 0x217   :  { %v1628_v58 = vadd.f32 %v1623_v52, %v1622_v48  ;;  %v1642_v59 = vmul.f32 %v1636_v53, %v4069_v46 }
 0x219   :  { %v1647_v61 = vadd.f32 %v1642_v59, %v1641_v56 }
 0x21b   :  { %v1536_v63 = vpop.f32.mrb[4].mxu0 }
 0x21c   :  { %v1624_v0 = vmul.f32 %v4085_v60, %v1536_v63  ;;  %v1637_v1 = vmul.f32 %v1536_v63, %v1536_v63  ;;  %v1538_v2 = vpop.f32.mrb[5].mxu0 }
 0x21d   :  { %v1625_v6 = vmul.f32 %v4087_v62, %v1538_v2  ;;  %v1638_v9 = vmul.f32 %v1538_v2, %v1538_v2  ;;  %v1540_v10 = vpop.f32.mrb[6].mxu0 }
 0x21e   :  { %v1629_v15 = vadd.f32 %v1628_v58, %v1624_v0  ;;  %v1643_v16 = vmul.f32 %v1637_v1, %v4085_v60  ;;  %v1541_v17 = vpop.f32.mrb[7].mxu0 }
 0x21f   :  { %v1644_v18 = vmul.f32 %v1638_v9, %v4087_v62 }
 0x220   :  { %v1630_v20 = vadd.f32 %v1629_v15, %v1625_v6  ;;  %v1648_v21 = vadd.f32 %v1647_v61, %v1643_v16 }
 0x222   :  { %v1649_v23 = vadd.f32 %v1648_v21, %v1644_v18 }
 0x223   :  { %v1577_v24 = vpop.f32.mrb[8].mxu0 }
 0x224   :  { %v1626_v25 = vmul.f32 %v4093_v19, %v1577_v24  ;;  %v1639_v26 = vmul.f32 %v1577_v24, %v1577_v24  ;;  %v1579_v27 = vpop.f32.mrb[9].mxu0 }
 0x225   :  { %v1640_v28 = vmul.f32 %v1579_v27, %v1579_v27  ;;  %v1581_v29 = vpop.f32.mrb[10].mxu0  ;;  %v1627_v30 = vmul.f32 %v4095_v22, %v1579_v27 }
 0x226   :  { %v1582_v31 = vpop.f32.mrb[11].mxu0  ;;  %v1631_v32 = vadd.f32 %v1630_v20, %v1626_v25  ;;  %v1645_v33 = vmul.f32 %v1639_v26, %v4093_v19  ;;  %v1731_v29 = vld [vmem:[%s4490_s2 + $0x8] sm:$0xff] }
 0x227   :  { %v1646_v34 = vmul.f32 %v1640_v28, %v4095_v22 }
 0x228   :  { %v1632_v35 = vadd.f32 %v1631_v32, %v1627_v30  ;;  %v1650_v4 = vadd.f32 %v1649_v23, %v1645_v33 }
 0x22a   :  { %1633 = vadd.xlane.f32.xlu0 %v1632_v35  ;;  %v1651_v8 = vadd.f32 %v1650_v4, %v1646_v34  ;;  %v1732_v35 = vpack.c.bf16 %v1731_v29, %v1731_v29 }
 0x22c   :  { %1652 = vadd.xlane.f32.xlu1 %v1651_v8 }
 0x2b7   :  { %v1634_v36 = vpop.xlane.xlu0 %1633 }
 0x2b8   :  { %v1654_v37 = vmul.f32 0.001953125, %v1634_v36 }
 0x2b9   :  { %v1653_v12 = vpop.xlane.xlu1 %1652 }
 0x2ba   :  { %v1656_v7 = vmul.f32 %v1654_v37, %v1654_v37  ;;  %v1655_v38 = vmul.f32 0.001953125, %v1653_v12 }
 0x2bc   :  { %v1657_v14 = vsub.f32 %v1655_v38, %v1656_v7 }
 0x2be   :  { %v1658_v39 = vadd.f32 1e-05, %v1657_v14 }
 0x2c0   :  { %3686 = vrsqrt.f32 %v1658_v39 }
 0x2ca   :  { %v3687_v41 = vpop.eup %3686 }
 0x2cb   :  { %v1660_v42 = vmul.f32 %v3687_v41, %v4104_v11 }
 0x2cd   :  { %1669 = vperm.xlu1 %3682, %v1660_v42   ;;  %v1661_v43 = vmul.f32 %v1660_v42, %v1654_v37 }
 0x2cf   :  { %1663 = vrot.lane.b32.xlu0 %v1661_v43, %s3694_s10 }
 0x2d1   :  { %1740 = vrot.lane.b32.xlu1 %v3700_v49, %s3691_s26 }
 0x341   :  { %v1664_v44 = vpop.permute.xlu0 %1663 }
 0x342   :  { %v1666_v48 = vsub.f32 %v4104_v11, %v1664_v44 }
 0x344   :  { %1680 = vperm.xlu0 %3683, %v1666_v48  }
 0x34c   :  { %v1670_v51 = vpop.permute.xlu1 %1669 }
 0x34d   :  { %v1672_v52 = vmul.f32 %v1670_v51, %v4071_v47  ;;  %v1673_v53 = vmul.f32 %v1670_v51, %v4077_v50  ;;  %v1674_v54 = vmul.f32 %v1670_v51, %v1536_v63  ;;  %v1675_v55 = vmul.f32 %v1670_v51, %v1538_v2 }
 0x34e   :  { %v1676_v56 = vmul.f32 %v1670_v51, %v1577_v24  ;;  %v1677_v57 = vmul.f32 %v1670_v51, %v1579_v27 }
 0x350   :  { %v1741_v28 = vpop.permute.xlu1 %1740 }
 0x3c3   :  { %v1681_v58 = vpop.permute.xlu0 %1680 }
 0x3c4   :  { %v1683_v59 = vadd.f32 %v1681_v58, %v1672_v52  ;;  %v1684_v61 = vadd.f32 %v1681_v58, %v1673_v53  ;;  %v1685_v0 = vadd.f32 %v1681_v58, %v1674_v54  ;;  %v1686_v1 = vadd.f32 %v1681_v58, %v1675_v55  ;;  %v1715_v54 = vld [vmem:[%s4490_s2] sm:$0xff] }
 0x3c5   :  { %v1687_v5 = vadd.f32 %v1681_v58, %v1676_v56  ;;  %v1688_v6 = vadd.f32 %v1681_v58, %v1677_v57  ;;  %v1716_v56 = vpack.c.bf16 %v1715_v54, %v1715_v54 }
 0x3c6   :  { %v1689_v9 = vmax.f32 %v1683_v59, 0.0  ;;  %v1690_v10 = vmax.f32 %v1684_v61, 0.0  ;;  %v1691_v13 = vmax.f32 %v1685_v0, 0.0  ;;  %v1692_v15 = vmax.f32 %v1686_v1, 0.0 }
 0x3c7   :  { %v1693_v50 = vmax.f32 %v1687_v5, 0.0  ;;  %v1694_v63 = vmax.f32 %v1688_v6, 0.0 }
 0x3c8   :  { %v1695_v16 = vmul.f32 %v1689_v9, %v4067_v45  ;;  %v1696_v47 = vmul.f32 %v1690_v10, %v4069_v46  ;;  %v1697_v2 = vmul.f32 %v1691_v13, %v4085_v60  ;;  %v1698_v17 = vmul.f32 %v1692_v15, %v4087_v62 }
 0x3c9   :  { %v1699_v21 = vmul.f32 %v1693_v50, %v4093_v19  ;;  %v1700_v23 = vmul.f32 %v1694_v63, %v4095_v22  ;;  %v2068_v63 = vld [vmem:[%s4490_s2 + $0x10] sm:$0xff] }
 0x3ca   :  { %v4117_v18 = vpack.c.bf16 %v1695_v16, %v1695_v16  ;;  %v4119_v20 = vpack.c.bf16 %v1696_v47, %v1696_v47  ;;  %v4127_v24 = vpack.c.bf16 %v1697_v2, %v1697_v2  ;;  %v4129_v25 = vpack.c.bf16 %v1698_v17, %v1698_v17 }
 0x3cb   :  { %v4135_v26 = vpack.c.bf16 %v1699_v21, %v1699_v21  ;;  %v4137_v27 = vpack.c.bf16 %v1700_v23, %v1700_v23  ;;  %v2069_v17 = vpack.c.bf16 %v2068_v63, %v2068_v63 }
 0x3cc   :  { %1744 = vrot.lane.b32.xlu0 %v4119_v20, %s3691_s26  ;;  %1742 = vrot.lane.b32.xlu1 %v4117_v18, %s3691_s26 }
 0x3d0   :  { %1748 = vrot.lane.b32.xlu0 %v4129_v25, %s3691_s26  ;;  %1746 = vrot.lane.b32.xlu1 %v4127_v24, %s3691_s26 }
 0x3d4   :  { %1752 = vrot.lane.b32.xlu0 %v4137_v27, %s3691_s26  ;;  %1750 = vrot.lane.b32.xlu1 %v4135_v26, %s3691_s26 }
 0x3d8   :  { %1906 = vrot.lane.b32.xlu0 %v4117_v18, %s3692_s8  ;;  %1904 = vrot.lane.b32.xlu1 %v3700_v49, %s3692_s8 }
 0x3dc   :  { %1910 = vrot.lane.b32.xlu0 %v4127_v24, %s3692_s8  ;;  %1908 = vrot.lane.b32.xlu1 %v4119_v20, %s3692_s8 }
 0x3e0   :  { %1914 = vrot.lane.b32.xlu0 %v4135_v26, %s3692_s8  ;;  %1912 = vrot.lane.b32.xlu1 %v4129_v25, %s3692_s8 }
 0x3e4   :  { %2070 = vrot.lane.b32.xlu0 %v3700_v49, %s3693_s9  ;;  %1916 = vrot.lane.b32.xlu1 %v4137_v27, %s3692_s8 }
 0x3e8   :  { %2074 = vrot.lane.b32.xlu0 %v4119_v20, %s3693_s9  ;;  %2072 = vrot.lane.b32.xlu1 %v4117_v18, %s3693_s9 }
 0x3ec   :  { %2078 = vrot.lane.b32.xlu0 %v4129_v25, %s3693_s9  ;;  %2076 = vrot.lane.b32.xlu1 %v4127_v24, %s3693_s9 }
 0x3f0   :  { %2082 = vrot.lane.b32.xlu0 %v4137_v27, %s3693_s9  ;;  %2080 = vrot.lane.b32.xlu1 %v4135_v26, %s3693_s9 }
 0x3f4   :  { %2244 = vrot.lane.b32.xlu0 %v4117_v18, %s3694_s10  ;;  %2242 = vrot.lane.b32.xlu1 %v3700_v49, %s3694_s10 }
 0x3f8   :  { %2248 = vrot.lane.b32.xlu0 %v4127_v24, %s3694_s10  ;;  %2246 = vrot.lane.b32.xlu1 %v4119_v20, %s3694_s10 }
 0x3fc   :  { %2252 = vrot.lane.b32.xlu0 %v4135_v26, %s3694_s10  ;;  %2250 = vrot.lane.b32.xlu1 %v4129_v25, %s3694_s10 }
 0x400   :  { %2587 = vrot.lane.b32.xlu0 %v4117_v18, %s3695_s11  ;;  %2254 = vrot.lane.b32.xlu1 %v4137_v27, %s3694_s10 }
 0x404   :  { %2591 = vrot.lane.b32.xlu0 %v4127_v24, %s3695_s11  ;;  %2589 = vrot.lane.b32.xlu1 %v4119_v20, %s3695_s11 }
 0x408   :  { %2595 = vrot.lane.b32.xlu0 %v4135_v26, %s3695_s11  ;;  %2593 = vrot.lane.b32.xlu1 %v4129_v25, %s3695_s11 }
 0x40c   :  { %2599 = vrot.lane.b32.xlu0 %v3700_v49, %s3695_s11  ;;  %2597 = vrot.lane.b32.xlu1 %v4137_v27, %s3695_s11 }
 0x410   :  { %2761 = vrot.lane.b32.xlu0 %v4119_v20, %s3696_s14  ;;  %2759 = vrot.lane.b32.xlu1 %v4117_v18, %s3696_s14 }
 0x414   :  { %2765 = vrot.lane.b32.xlu0 %v4129_v25, %s3696_s14  ;;  %2763 = vrot.lane.b32.xlu1 %v4127_v24, %s3696_s14 }
 0x418   :  { %2769 = vrot.lane.b32.xlu0 %v4137_v27, %s3696_s14  ;;  %2767 = vrot.lane.b32.xlu1 %v4135_v26, %s3696_s14 }
 0x41c   :  { %2931 = vrot.lane.b32.xlu0 %v4117_v18, %s3697_s15  ;;  %2771 = vrot.lane.b32.xlu1 %v3700_v49, %s3696_s14 }
 0x420   :  { %2935 = vrot.lane.b32.xlu0 %v4127_v24, %s3697_s15  ;;  %2933 = vrot.lane.b32.xlu1 %v4119_v20, %s3697_s15 }
 0x424   :  { %2939 = vrot.lane.b32.xlu0 %v4135_v26, %s3697_s15  ;;  %2937 = vrot.lane.b32.xlu1 %v4129_v25, %s3697_s15 }
 0x428   :  { %2943 = vrot.lane.b32.xlu0 %v3700_v49, %s3697_s15  ;;  %2941 = vrot.lane.b32.xlu1 %v4137_v27, %s3697_s15 }
 0x42c   :  { %3105 = vrot.lane.b32.xlu0 %v4119_v20, %s3698_s16  ;;  %3103 = vrot.lane.b32.xlu1 %v4117_v18, %s3698_s16 }
 0x430   :  { %3109 = vrot.lane.b32.xlu0 %v4129_v25, %s3698_s16  ;;  %3107 = vrot.lane.b32.xlu1 %v4127_v24, %s3698_s16 }
 0x434   :  { %3113 = vrot.lane.b32.xlu0 %v4137_v27, %s3698_s16  ;;  %3111 = vrot.lane.b32.xlu1 %v4135_v26, %s3698_s16 }
 0x438   :  { %3115 = vrot.lane.b32.xlu1 %v3700_v49, %s3698_s16 }
 0x43e   :  { %v1745_v30 = vpop.permute.xlu0 %1744  ;;  %v1743_v31 = vpop.permute.xlu1 %1742 }
 0x43f   :  { %v1755_v32 = vsel %vm61_vm0, %v1743_v31, %v1745_v30  ;;  %v1754_v33 = vsel %vm61_vm0, %v1741_v28, %v1743_v31 }
 0x440   :  { %3423 = vmatprep.subr.msk.bf16.mxu1 %vm72_vm1, %v1755_v32  ;;  %v1764_v34 = vsel %vm72_vm1, %v1754_v33, 0 }
 0x441   :  { %1782 = vmatpush1.bf16.msra.mxu1 %v1764_v34 }
 0x442   :  { %v1749_v4 = vpop.permute.xlu0 %1748  ;;  %v1747_v8 = vpop.permute.xlu1 %1746 }
 0x443   :  { %v1756_v36 = vsel %vm61_vm0, %v1745_v30, %v1747_v8  ;;  %v1757_v37 = vsel %vm61_vm0, %v1747_v8, %v1749_v4 }
 0x444   :  { %v1770_v12 = vsel %vm72_vm1, %v1756_v36, 0  ;;  %3424 = vmatmul.mubr.msk.bf16.vlgmr.msra.gmra.mrb[0].mxu1 %vm68_vm2, %v1732_v35  ;;  %3425 = vmatprep.subr.msk.bf16.mxu1 %vm72_vm1, %v1757_v37 }
 0x445   :  { %1823 = vmatpush1.bf16.msra.mxu1 %v1770_v12  ;;  %1854 = vmatprep.mubr.bf16.mxu1 %v3690_v3 }
 0x446   :  { %v1753_v7 = vpop.permute.xlu0 %1752  ;;  %v1751_v38 = vpop.permute.xlu1 %1750 }
 0x447   :  { %v1759_v14 = vsel %vm61_vm0, %v1751_v38, %v1753_v7  ;;  %v1758_v39 = vsel %vm61_vm0, %v1749_v4, %v1751_v38  ;;  %v2240_v7 = vld [vmem:[%s4490_s2 + $0x18] sm:$0xff] }
 0x448   :  { %3427 = vmatprep.subr.msk.bf16.mxu1 %vm72_vm1, %v1759_v14  ;;  %v1776_v42 = vsel %vm72_vm1, %v1758_v39, 0  ;;  %v2241_v38 = vpack.c.bf16 %v2240_v7, %v2240_v7 }
 0x44a   :  { %v1907_v40 = vpop.permute.xlu0 %1906  ;;  %v1905_v41 = vpop.permute.xlu1 %1904 }
 0x44b   :  { %v1918_v49 = vsel %vm228_vm3, %v1905_v41, %v1907_v40 }
 0x44c   :  { %3426 = vmatmul.mubr.msk.bf16.vlgmr.msra.gmra.mrb[4].mxu1 %vm68_vm2, %v1732_v35  ;;  %v1928_v53 = vsel %vm72_vm1, %v1918_v49, 0  ;;  %v2412_v49 = vld [vmem:[%s4490_s2 + $0x20] sm:$0xff] }
 0x44d   :  { %1864 = vmatpush1.bf16.msra.mxu1 %v1776_v42  ;;  %1895 = vmatprep.mubr.bf16.mxu1 %v3690_v3 }
 0x44e   :  { %v1909_v43 = vpop.permute.xlu1 %1908  ;;  %v1911_v48 = vpop.permute.xlu0 %1910 }
 0x44f   :  { %v1919_v44 = vsel %vm228_vm3, %v1907_v40, %v1909_v43  ;;  %v1920_v57 = vsel %vm228_vm3, %v1909_v43, %v1911_v48 }
 0x450   :  { %3429 = vmatprep.subr.msk.bf16.mxu1 %vm72_vm1, %v1919_v44  ;;  %v1934_v59 = vsel %vm72_vm1, %v1920_v57, 0 }
 0x452   :  { %v1913_v51 = vpop.permute.xlu1 %1912  ;;  %v1915_v55 = vpop.permute.xlu0 %1914 }
 0x453   :  { %v1921_v52 = vsel %vm228_vm3, %v1911_v48, %v1913_v51  ;;  %v1922_v1 = vsel %vm228_vm3, %v1913_v51, %v1915_v55  ;;  %v2418_v48 = vsel %vm72_vm1, %v4117_v18, 0  ;;  %v2413_v51 = vpack.c.bf16 %v2412_v49, %v2412_v49 }
 0x454   :  { %3428 = vmatmul.mubr.msk.bf16.vlgmr.msra.gmra.mrb[8].mxu1 %vm68_vm2, %v1732_v35  ;;  %v1940_v9 = vsel %vm72_vm1, %v1922_v1, 0 }
 0x455   :  { %1946 = vmatpush1.bf16.msra.mxu1 %v1928_v53  ;;  %1977 = vmatprep.mubr.bf16.mxu1 %v3690_v3 }
 0x456   :  { %3431 = vmatprep.subr.msk.bf16.mxu1 %vm72_vm1, %v1921_v52  ;;  %v1917_v58 = vpop.permute.xlu1 %1916  ;;  %v2071_v61 = vpop.permute.xlu0 %2070 }
 0x457   :  { %v1923_v0 = vsel %vm228_vm3, %v1915_v55, %v1917_v58 }
 0x45a   :  { %v2075_v5 = vpop.permute.xlu0 %2074  ;;  %v2073_v6 = vpop.permute.xlu1 %2072 }
 0x45b   :  { %v2085_v10 = vsel %vm395_vm4, %v2073_v6, %v2075_v5  ;;  %v2084_v15 = vsel %vm395_vm4, %v2071_v61, %v2073_v6 }
 0x45c   :  { %3430 = vmatmul.mubr.msk.bf16.vlgmr.msra.gmra.mrb[0].mxu1 %vm68_vm2, %v1716_v56  ;;  %v2094_v47 = vsel %vm72_vm1, %v2084_v15, 0 }
 0x45d   :  { %1987 = vmatpush1.bf16.msra.mxu1 %v1934_v59  ;;  %2018 = vmatprep.mubr.bf16.mxu1 %v3690_v3 }
 0x45e   :  { %3433 = vmatprep.subr.msk.bf16.mxu1 %vm72_vm1, %v1923_v0  ;;  %v2077_v13 = vpop.permute.xlu1 %2076  ;;  %v2079_v16 = vpop.permute.xlu0 %2078 }
 0x45f   :  { %v2087_v50 = vsel %vm395_vm4, %v2077_v13, %v2079_v16  ;;  %v2086_v21 = vsel %vm395_vm4, %v2075_v5, %v2077_v13 }
 0x460   :  { %v2100_v28 = vsel %vm72_vm1, %v2086_v21, 0  ;;  %v2757_v21 = vld [vmem:[%s4490_s2 + $0x30] sm:$0xff] }
 0x462   :  { %v2081_v2 = vpop.permute.xlu1 %2080  ;;  %v2083_v23 = vpop.permute.xlu0 %2082 }
 0x463   :  { %v2089_v30 = vsel %vm395_vm4, %v2081_v2, %v2083_v23  ;;  %v2088_v31 = vsel %vm395_vm4, %v2079_v16, %v2081_v2 }
 0x464   :  { %3432 = vmatmul.mubr.msk.bf16.vlgmr.msra.gmra.mrb[4].mxu1 %vm68_vm2, %v1716_v56  ;;  %v2106_v33 = vsel %vm72_vm1, %v2088_v31, 0 }
 0x465   :  { %2028 = vmatpush1.bf16.msra.mxu1 %v1940_v9  ;;  %2059 = vmatprep.mubr.bf16.mxu1 %v3690_v3 }
 0x466   :  { %3435 = vmatprep.subr.msk.bf16.mxu1 %vm72_vm1, %v2085_v10  ;;  %v2243_v29 = vpop.permute.xlu1 %2242  ;;  %v2245_v34 = vpop.permute.xlu0 %2244 }
 0x467   :  { %v2256_v4 = vsel %vm568_vm5, %v2243_v29, %v2245_v34 }
 0x468   :  { %v2266_v36 = vsel %vm72_vm1, %v2256_v4, 0 }
 0x46a   :  { %v2247_v32 = vpop.permute.xlu1 %2246  ;;  %v2249_v37 = vpop.permute.xlu0 %2248 }
 0x46b   :  { %v2257_v35 = vsel %vm568_vm5, %v2245_v34, %v2247_v32  ;;  %v2258_v14 = vsel %vm568_vm5, %v2247_v32, %v2249_v37 }
 0x46c   :  { %3434 = vmatmul.mubr.msk.bf16.vlgmr.msra.gmra.mrb[8].mxu1 %vm68_vm2, %v1716_v56  ;;  %v2272_v40 = vsel %vm72_vm1, %v2258_v14, 0 }
 0x46d   :  { %2112 = vmatpush1.bf16.msra.mxu1 %v2094_v47  ;;  %2143 = vmatprep.mubr.bf16.mxu1 %v3690_v3 }
 0x46e   :  { %3437 = vmatprep.subr.msk.bf16.mxu1 %vm72_vm1, %v2087_v50  ;;  %v2251_v8 = vpop.permute.xlu1 %2250  ;;  %v2253_v41 = vpop.permute.xlu0 %2252 }
 0x46f   :  { %v2259_v12 = vsel %vm568_vm5, %v2249_v37, %v2251_v8  ;;  %v2260_v43 = vsel %vm568_vm5, %v2251_v8, %v2253_v41 }
 0x470   :  { %v2278_v44 = vsel %vm72_vm1, %v2260_v43, 0 }
 0x472   :  { %v2255_v39 = vpop.permute.xlu1 %2254  ;;  %v2588_v52 = vpop.permute.xlu0 %2587 }
 0x473   :  { %v2261_v42 = vsel %vm568_vm5, %v2253_v41, %v2255_v39  ;;  %v2929_v39 = vld [vmem:[%s4490_s2 + $0x38] sm:$0xff] }
 0x474   :  { %3436 = vmatmul.mubr.msk.bf16.vlgmr.msra.gmra.mrb[0].mxu1 %vm68_vm2, %v2069_v17  ;;  %v2930_v41 = vpack.c.bf16 %v2929_v39, %v2929_v39 }
 0x475   :  { %2153 = vmatpush1.bf16.msra.mxu1 %v2100_v28  ;;  %2184 = vmatprep.mubr.bf16.mxu1 %v3690_v3  ;;  %v2758_v28 = vpack.c.bf16 %v2757_v21, %v2757_v21 }
 0x476   :  { %3439 = vmatprep.subr.msk.bf16.mxu1 %vm72_vm1, %v2089_v30  ;;  %v2592_v18 = vpop.permute.xlu0 %2591  ;;  %v2590_v53 = vpop.permute.xlu1 %2589 }
 0x477   :  { %v2602_v54 = vsel %vm914_vm6, %v2590_v53, %v2592_v18  ;;  %v2601_v55 = vsel %vm914_vm6, %v2588_v52, %v2590_v53 }
 0x47a   :  { %v2596_v56 = vpop.permute.xlu0 %2595 }
 0x47c   :  { %3438 = vmatmul.mubr.msk.bf16.vlgmr.msra.gmra.mrb[4].mxu1 %vm68_vm2, %v2069_v17 }
 0x47d   :  { %2194 = vmatpush1.bf16.msra.mxu1 %v2106_v33  ;;  %2225 = vmatprep.mubr.bf16.mxu1 %v3690_v3 }
 0x47e   :  { %3441 = vmatprep.subr.msk.bf16.mxu1 %vm72_vm1, %v2257_v35  ;;  %v2600_v0 = vpop.permute.xlu0 %2599 }
 0x482   :  { %v2762_v10 = vpop.permute.xlu0 %2761 }
 0x484   :  { %3440 = vmatmul.mubr.msk.bf16.vlgmr.msra.gmra.mrb[8].mxu1 %vm68_vm2, %v2069_v17 }
 0x485   :  { %2284 = vmatpush1.bf16.msra.mxu1 %v2266_v36  ;;  %2315 = vmatprep.mubr.bf16.mxu1 %v3690_v3 }
 0x486   :  { %3443 = vmatprep.subr.msk.bf16.mxu1 %vm72_vm1, %v2259_v12  ;;  %v2766_v47 = vpop.permute.xlu0 %2765 }
 0x48a   :  { %v2770_v23 = vpop.permute.xlu0 %2769 }
 0x48c   :  { %3442 = vmatmul.mubr.msk.bf16.vlgmr.msra.gmra.mrb[0].mxu1 %vm68_vm2, %v2241_v38 }
 0x48d   :  { %2325 = vmatpush1.bf16.msra.mxu1 %v2272_v40  ;;  %2356 = vmatprep.mubr.bf16.mxu1 %v3690_v3 }
 0x48e   :  { %3445 = vmatprep.subr.msk.bf16.mxu1 %vm72_vm1, %v2261_v42  ;;  %v2932_v32 = vpop.permute.xlu0 %2931 }
 0x492   :  { %v2936_v35 = vpop.permute.xlu0 %2935 }
 0x494   :  { %3444 = vmatmul.mubr.msk.bf16.vlgmr.msra.gmra.mrb[4].mxu1 %vm68_vm2, %v2241_v38 }
 0x495   :  { %2366 = vmatpush1.bf16.msra.mxu1 %v2278_v44  ;;  %2397 = vmatprep.mubr.bf16.mxu1 %v3690_v3 }
 0x496   :  { %3447 = vmatprep.subr.msk.bf16.mxu1 %vm72_vm1, %v4119_v20  ;;  %v2424_v20 = vsel %vm72_vm1, %v4127_v24, 0  ;;  %v2594_v24 = vpop.permute.xlu1 %2593  ;;  %v2940_v7 = vpop.permute.xlu0 %2939 }
 0x497   :  { %v2604_v57 = vsel %vm914_vm6, %v2594_v24, %v2596_v56  ;;  %v2603_v61 = vsel %vm914_vm6, %v2592_v18, %v2594_v24 }
 0x498   :  { %v2617_v1 = vsel %vm72_vm1, %v2603_v61, 0 }
 0x49a   :  { %v2598_v58 = vpop.permute.xlu1 %2597  ;;  %v2944_v43 = vpop.permute.xlu0 %2943 }
 0x49b   :  { %v2606_v6 = vsel %vm914_vm6, %v2598_v58, %v2600_v0  ;;  %v2605_v9 = vsel %vm914_vm6, %v2596_v56, %v2598_v58 }
 0x49c   :  { %3446 = vmatmul.mubr.msk.bf16.vlgmr.msra.gmra.mrb[8].mxu1 %vm68_vm2, %v2241_v38  ;;  %v2623_v15 = vsel %vm72_vm1, %v2605_v9, 0 }
 0x49d   :  { %2436 = vmatpush1.bf16.msra.mxu1 %v2418_v48  ;;  %2467 = vmatprep.mubr.bf16.mxu1 %v3690_v3 }
 0x49e   :  { %3449 = vmatprep.subr.msk.bf16.mxu1 %vm72_vm1, %v4129_v25  ;;  %v2430_v25 = vsel %vm72_vm1, %v4135_v26, 0  ;;  %v2564_v26 = vld [vmem:[%s4490_s2 + $0x28] sm:$0xff]  ;;  %v2760_v5 = vpop.permute.xlu1 %2759  ;;  %v3106_v18 = vpop.permute.xlu0 %3105 }
 0x49f   :  { %v2565_v59 = vpack.c.bf16 %v2564_v26, %v2564_v26  ;;  %v2773_v50 = vsel %vm1087_vm7, %v2760_v5, %v2762_v10 }
 0x4a0   :  { %v2783_v2 = vsel %vm72_vm1, %v2773_v50, 0 }
 0x4a2   :  { %v2764_v13 = vpop.permute.xlu1 %2763 }
 0x4a3   :  { %v2774_v16 = vsel %vm1087_vm7, %v2762_v10, %v2764_v13  ;;  %v2775_v29 = vsel %vm1087_vm7, %v2764_v13, %v2766_v47 }
 0x4a4   :  { %3448 = vmatmul.mubr.msk.bf16.vlgmr.msra.gmra.mrb[0].mxu1 %vm68_vm2, %v2413_v51  ;;  %v2789_v31 = vsel %vm72_vm1, %v2775_v29, 0 }
 0x4a5   :  { %2477 = vmatpush1.bf16.msra.mxu1 %v2424_v20  ;;  %2508 = vmatprep.mubr.bf16.mxu1 %v3690_v3 }
 0x4a6   :  { %3451 = vmatprep.subr.msk.bf16.mxu1 %vm72_vm1, %v4137_v27  ;;  %v2611_v27 = vsel %vm72_vm1, %v2601_v55, 0  ;;  %v2768_v63 = vpop.permute.xlu1 %2767  ;;  %v3110_v55 = vpop.permute.xlu0 %3109 }
 0x4a7   :  { %v2776_v17 = vsel %vm1087_vm7, %v2766_v47, %v2768_v63  ;;  %v2777_v34 = vsel %vm1087_vm7, %v2768_v63, %v2770_v23 }
 0x4a8   :  { %v2795_v8 = vsel %vm72_vm1, %v2777_v34, 0 }
 0x4aa   :  { %v2772_v30 = vpop.permute.xlu1 %2771  ;;  %v3114_v61 = vpop.permute.xlu0 %3113 }
 0x4ab   :  { %v2778_v33 = vsel %vm1087_vm7, %v2770_v23, %v2772_v30 }
 0x4ac   :  { %3450 = vmatmul.mubr.msk.bf16.vlgmr.msra.gmra.mrb[4].mxu1 %vm68_vm2, %v2413_v51 }
 0x4ad   :  { %2518 = vmatpush1.bf16.msra.mxu1 %v2430_v25  ;;  %2549 = vmatprep.mubr.bf16.mxu1 %v3690_v3 }
 0x4ae   :  { %3453 = vmatprep.subr.msk.bf16.mxu1 %vm72_vm1, %v2602_v54  ;;  %v2934_v4 = vpop.permute.xlu1 %2933 }
 0x4af   :  { %v2946_v36 = vsel %vm1260_vm8, %v2934_v4, %v2936_v35  ;;  %v2945_v12 = vsel %vm1260_vm8, %v2932_v32, %v2934_v4 }
 0x4b0   :  { %v2955_v38 = vsel %vm72_vm1, %v2945_v12, 0 }
 0x4b2   :  { %v2938_v37 = vpop.permute.xlu1 %2937 }
 0x4b3   :  { %v2948_v14 = vsel %vm1260_vm8, %v2938_v37, %v2940_v7  ;;  %v2947_v42 = vsel %vm1260_vm8, %v2936_v35, %v2938_v37 }
 0x4b4   :  { %3452 = vmatmul.mubr.msk.bf16.vlgmr.msra.gmra.mrb[8].mxu1 %vm68_vm2, %v2413_v51  ;;  %v2961_v44 = vsel %vm72_vm1, %v2947_v42, 0 }
 0x4b5   :  { %2629 = vmatpush1.bf16.msra.mxu1 %v2611_v27  ;;  %2660 = vmatprep.mubr.bf16.mxu1 %v3690_v3  ;;  %v3101_v27 = vld [vmem:[%s4490_s2 + $0x40] sm:$0xff] }
 0x4b6   :  { %3455 = vmatprep.subr.msk.bf16.mxu1 %vm72_vm1, %v2604_v57  ;;  %v2942_v40 = vpop.permute.xlu1 %2941  ;;  %v3102_v57 = vpack.c.bf16 %v3101_v27, %v3101_v27 }
 0x4b7   :  { %v2950_v49 = vsel %vm1260_vm8, %v2942_v40, %v2944_v43  ;;  %v2949_v51 = vsel %vm1260_vm8, %v2940_v7, %v2942_v40 }
 0x4b8   :  { %v2967_v20 = vsel %vm72_vm1, %v2949_v51, 0 }
 0x4ba   :  { %v3104_v48 = vpop.permute.xlu1 %3103 }
 0x4bb   :  { %v3117_v25 = vsel %vm1433_vm9, %v3104_v48, %v3106_v18  ;;  %v3701_v48 = vmov 2  }
 0x4bc   :  { %3454 = vmatmul.mubr.msk.bf16.vlgmr.msra.gmra.mrb[0].mxu1 %vm68_vm2, %v2565_v59  ;;  %v3127_v24 = vsel %vm72_vm1, %v3117_v25, 0  ;;  %3684 = vset.pattern.permute.xlu1 %v3701_v48 }
 0x4bd   :  { %2670 = vmatpush1.bf16.msra.mxu1 %v2617_v1  ;;  %2701 = vmatprep.mubr.bf16.mxu1 %v3690_v3 }
 0x4be   :  { %3457 = vmatprep.subr.msk.bf16.mxu1 %vm72_vm1, %v2606_v6  ;;  %v3108_v52 = vpop.permute.xlu1 %3107 }
 0x4bf   :  { %v3118_v53 = vsel %vm1433_vm9, %v3106_v18, %v3108_v52  ;;  %v3119_v26 = vsel %vm1433_vm9, %v3108_v52, %v3110_v55 }
 0x4c2   :  { %v3112_v54 = vpop.permute.xlu1 %3111 }
 0x4c3   :  { %v3120_v56 = vsel %vm1433_vm9, %v3110_v55, %v3112_v54  ;;  %v3121_v1 = vsel %vm1433_vm9, %v3112_v54, %v3114_v61  ;;  %v3702_v54 = vmov 3  }
 0x4c4   :  { %3456 = vmatmul.mubr.msk.bf16.vlgmr.msra.gmra.mrb[4].mxu1 %vm68_vm2, %v2565_v59  ;;  %v3139_v5 = vsel %vm72_vm1, %v3121_v1, 0  ;;  %3685 = vset.pattern.permute.xlu0 %v3702_v54 }
 0x4c5   :  { %2711 = vmatpush1.bf16.msra.mxu1 %v2623_v15  ;;  %2742 = vmatprep.mubr.bf16.mxu1 %v3690_v3 }
 0x4c6   :  { %3459 = vmatprep.subr.msk.bf16.mxu1 %vm72_vm1, %v2774_v16  ;;  %v3116_v58 = vpop.permute.xlu1 %3115 }
 0x4c7   :  { %v3122_v0 = vsel %vm1433_vm9, %v3114_v61, %v3116_v58  ;;  %v3341_v61 = vld [vmem:[%s4486_s0 + $0x8] sm:$0xff] }
 0x4cc   :  { %3458 = vmatmul.mubr.msk.bf16.vlgmr.msra.gmra.mrb[8].mxu1 %vm68_vm2, %v2565_v59  ;;  %v3133_v59 = vsel %vm72_vm1, %v3119_v26, 0 }
 0x4cd   :  { %2801 = vmatpush1.bf16.msra.mxu1 %v2783_v2  ;;  %2832 = vmatprep.mubr.bf16.mxu1 %v3690_v3 }
 0x4ce   :  { %3461 = vmatprep.subr.msk.bf16.mxu1 %vm72_vm1, %v2776_v17 }
 0x4d4   :  { %3460 = vmatmul.mubr.msk.bf16.vlgmr.msra.gmra.mrb[0].mxu1 %vm68_vm2, %v2758_v28 }
 0x4d5   :  { %2842 = vmatpush1.bf16.msra.mxu1 %v2789_v31  ;;  %2873 = vmatprep.mubr.bf16.mxu1 %v3690_v3 }
 0x4d6   :  { %3463 = vmatprep.subr.msk.bf16.mxu1 %vm72_vm1, %v2778_v33 }
 0x4dc   :  { %3462 = vmatmul.mubr.msk.bf16.vlgmr.msra.gmra.mrb[4].mxu1 %vm68_vm2, %v2758_v28 }
 0x4dd   :  { %2883 = vmatpush1.bf16.msra.mxu1 %v2795_v8  ;;  %2914 = vmatprep.mubr.bf16.mxu1 %v3690_v3 }
 0x4de   :  { %3465 = vmatprep.subr.msk.bf16.mxu1 %vm72_vm1, %v2946_v36 }
 0x4e4   :  { %3464 = vmatmul.mubr.msk.bf16.vlgmr.msra.gmra.mrb[8].mxu1 %vm68_vm2, %v2758_v28 }
 0x4e5   :  { %2973 = vmatpush1.bf16.msra.mxu1 %v2955_v38  ;;  %3004 = vmatprep.mubr.bf16.mxu1 %v3690_v3 }
 0x4e6   :  { %3467 = vmatprep.subr.msk.bf16.mxu1 %vm72_vm1, %v2948_v14 }
 0x4ec   :  { %3466 = vmatmul.mubr.msk.bf16.vlgmr.msra.gmra.mrb[0].mxu1 %vm68_vm2, %v2930_v41 }
 0x4ed   :  { %3014 = vmatpush1.bf16.msra.mxu1 %v2961_v44  ;;  %3045 = vmatprep.mubr.bf16.mxu1 %v3690_v3 }
 0x4ee   :  { %3469 = vmatprep.subr.msk.bf16.mxu1 %vm72_vm1, %v2950_v49 }
 0x4f4   :  { %3468 = vmatmul.mubr.msk.bf16.vlgmr.msra.gmra.mrb[4].mxu1 %vm68_vm2, %v2930_v41 }
 0x4f5   :  { %3055 = vmatpush1.bf16.msra.mxu1 %v2967_v20  ;;  %3086 = vmatprep.mubr.bf16.mxu1 %v3690_v3 }
 0x4f6   :  { %3471 = vmatprep.subr.msk.bf16.mxu1 %vm72_vm1, %v3118_v53 }
 0x4fc   :  { %3470 = vmatmul.mubr.msk.bf16.vlgmr.msra.gmra.mrb[8].mxu1 %vm68_vm2, %v2930_v41 }
 0x4fd   :  { %3145 = vmatpush1.bf16.msra.mxu1 %v3127_v24  ;;  %3176 = vmatprep.mubr.bf16.mxu1 %v3690_v3 }
 0x4fe   :  { %3473 = vmatprep.subr.msk.bf16.mxu1 %vm72_vm1, %v3120_v56 }
 0x504   :  { %3472 = vmatmul.mubr.msk.bf16.vlgmr.msra.gmra.mrb[0].mxu1 %vm68_vm2, %v3102_v57 }
 0x505   :  { %3186 = vmatpush1.bf16.msra.mxu1 %v3133_v59  ;;  %3217 = vmatprep.mubr.bf16.mxu1 %v3690_v3 }
 0x506   :  { %3475 = vmatprep.subr.msk.bf16.mxu1 %vm72_vm1, %v3122_v0 }
 0x50c   :  { %3474 = vmatmul.mubr.msk.bf16.vlgmr.msra.gmra.mrb[4].mxu1 %vm68_vm2, %v3102_v57 }
 0x50d   :  { %3227 = vmatpush1.bf16.msra.mxu1 %v3139_v5  ;;  %3258 = vmatprep.mubr.bf16.mxu1 %v3690_v3  ;;  %v3342_v5 = vld [vmem:[%s4486_s0 + $0x10] sm:$0xff] }
 0x514   :  { %3476 = vmatmul.mubr.msk.bf16.vlgmr.msra.gmra.mrb[8].mxu1 %vm68_vm2, %v3102_v57 }
 0x5d7   :  { %v4429_v6 = vpop.f32.mrb[0].mxu1 }
 0x5d8   :  { %v3274_v9 = vmul.f32 %v4429_v6, %v4067_v45  ;;  %v3287_v10 = vmul.f32 %v4429_v6, %v4429_v6  ;;  %v3180_v13 = vpop.f32.mrb[1].mxu1 }
 0x5d9   :  { %v3275_v15 = vmul.f32 %v3180_v13, %v4069_v46  ;;  %v3288_v16 = vmul.f32 %v3180_v13, %v3180_v13  ;;  %v3182_v47 = vpop.f32.mrb[2].mxu1 }
 0x5da   :  { %v3293_v50 = vmul.f32 %v3287_v10, %v4067_v45  ;;  %v3183_v63 = vpop.f32.mrb[3].mxu1  ;;  %v3345_v10 = vld [vmem:[%s4486_s0 + $0x28] sm:$0xff] }
 0x5db   :  { %v3280_v2 = vadd.f32 %v3275_v15, %v3274_v9  ;;  %v3294_v3 = vmul.f32 %v3288_v16, %v4069_v46 }
 0x5dd   :  { %v3299_v17 = vadd.f32 %v3294_v3, %v3293_v50 }
 0x5df   :  { %v3219_v21 = vpop.f32.mrb[4].mxu1 }
 0x5e0   :  { %v3276_v23 = vmul.f32 %v3219_v21, %v4085_v60  ;;  %v3289_v28 = vmul.f32 %v3219_v21, %v3219_v21  ;;  %v3221_v29 = vpop.f32.mrb[5].mxu1 }
 0x5e1   :  { %v3277_v30 = vmul.f32 %v3221_v29, %v4087_v62  ;;  %v3290_v31 = vmul.f32 %v3221_v29, %v3221_v29  ;;  %v3223_v32 = vpop.f32.mrb[6].mxu1 }
 0x5e2   :  { %v3281_v33 = vadd.f32 %v3280_v2, %v3276_v23  ;;  %v3295_v34 = vmul.f32 %v3289_v28, %v4085_v60  ;;  %v3224_v35 = vpop.f32.mrb[7].mxu1 }
 0x5e3   :  { %v3296_v45 = vmul.f32 %v3290_v31, %v4087_v62 }
 0x5e4   :  { %v3300_v4 = vadd.f32 %v3299_v17, %v3295_v34  ;;  %v3282_v8 = vadd.f32 %v3281_v33, %v3277_v30 }
 0x5e6   :  { %v3301_v36 = vadd.f32 %v3300_v4, %v3296_v45 }
 0x5e7   :  { %v3260_v46 = vpop.f32.mrb[8].mxu1 }
 0x5e8   :  { %v3278_v37 = vmul.f32 %v3260_v46, %v4093_v19  ;;  %v3291_v12 = vmul.f32 %v3260_v46, %v3260_v46  ;;  %v3262_v7 = vpop.f32.mrb[9].mxu1 }
 0x5e9   :  { %v3279_v38 = vmul.f32 %v3262_v7, %v4095_v22  ;;  %v3292_v14 = vmul.f32 %v3262_v7, %v3262_v7  ;;  %v3264_v39 = vpop.f32.mrb[10].mxu1 }
 0x5ea   :  { %v3283_v40 = vadd.f32 %v3282_v8, %v3278_v37  ;;  %v3297_v41 = vmul.f32 %v3291_v12, %v4093_v19  ;;  %v3265_v42 = vpop.f32.mrb[11].mxu1 }
 0x5eb   :  { %v3298_v60 = vmul.f32 %v3292_v14, %v4095_v22 }
 0x5ec   :  { %v3284_v43 = vadd.f32 %v3283_v40, %v3279_v38  ;;  %v3302_v62 = vadd.f32 %v3301_v36, %v3297_v41 }
 0x5ee   :  { %3285 = vadd.xlane.f32.xlu0 %v3284_v43  ;;  %v3303_v44 = vadd.f32 %v3302_v62, %v3298_v60 }
 0x5f0   :  { %3304 = vadd.xlane.f32.xlu1 %v3303_v44 }
 0x67b   :  { %v3286_v49 = vpop.xlane.xlu0 %3285 }
 0x67c   :  { %v3306_v51 = vmul.f32 0.001953125, %v3286_v49 }
 0x67d   :  { %v3305_v52 = vpop.xlane.xlu1 %3304 }
 0x67e   :  { %v3308_v20 = vmul.f32 %v3306_v51, %v3306_v51  ;;  %v3307_v18 = vmul.f32 0.001953125, %v3305_v52 }
 0x680   :  { %v3309_v53 = vsub.f32 %v3307_v18, %v3308_v20 }
 0x682   :  { %v3310_v25 = vadd.f32 1e-05, %v3309_v53 }
 0x684   :  { %3688 = vrsqrt.f32 %v3310_v25 }
 0x68e   :  { %v3689_v19 = vpop.eup %3688 }
 0x68f   :  { %v3312_v22 = vmul.f32 %v3689_v19, %v4104_v11 }
 0x691   :  { %3321 = vperm.xlu1 %3684, %v3312_v22   ;;  %v3313_v24 = vmul.f32 %v3312_v22, %v3306_v51 }
 0x693   :  { %3315 = vrot.lane.b32.xlu0 %v3313_v24, %s3694_s10 }
 0x705   :  { %v3316_v55 = vpop.permute.xlu0 %3315 }
 0x706   :  { %v3318_v56 = vsub.f32 %v4104_v11, %v3316_v55  ;;  %v3343_v11 = vld [vmem:[%s4486_s0 + $0x18] sm:$0xff] }
 0x708   :  { %3332 = vperm.xlu0 %3685, %v3318_v56  }
 0x710   :  { %v3322_v27 = vpop.permute.xlu1 %3321 }
 0x711   :  { %v3324_v57 = vmul.f32 %v3322_v27, %v4429_v6  ;;  %v3325_v26 = vmul.f32 %v3322_v27, %v3180_v13  ;;  %v3326_v58 = vmul.f32 %v3322_v27, %v3219_v21  ;;  %v3327_v59 = vmul.f32 %v3322_v27, %v3221_v29  ;;  %v3344_v6 = vld [vmem:[%s4486_s0 + $0x20] sm:$0xff]  ;;  %v3346_v13 = vld [vmem:[%s4486_s0 + $0x30] sm:$0xff] }
 0x712   :  { %v3328_v0 = vmul.f32 %v3322_v27, %v3260_v46  ;;  %v3329_v1 = vmul.f32 %v3322_v27, %v3262_v7 }
 0x787   :  { %v3333_v9 = vpop.permute.xlu0 %3332 }
 0x788   :  { %v3335_v15 = vadd.f32 %v3333_v9, %v3324_v57  ;;  %v3336_v16 = vadd.f32 %v3333_v9, %v3325_v26  ;;  %v3337_v47 = vadd.f32 %v3333_v9, %v3326_v58  ;;  %v3338_v50 = vadd.f32 %v3333_v9, %v3327_v59 }
 0x789   :  { %v3339_v63 = vadd.f32 %v3333_v9, %v3328_v0  ;;  %v3340_v2 = vadd.f32 %v3333_v9, %v3329_v1 }
 0x78a   :  { %v3347_v3 = vadd.f32 %v3341_v61, %v3335_v15  ;;  %v3348_v17 = vadd.f32 %v3342_v5, %v3336_v16  ;;  %v3349_v21 = vadd.f32 %v3343_v11, %v3337_v47  ;;  %v3350_v23 = vadd.f32 %v3344_v6, %v3338_v50 }
 0x78b   :  { %v3351_v28 = vadd.f32 %v3345_v10, %v3339_v63  ;;  %v3352_v29 = vadd.f32 %v3346_v13, %v3340_v2 }
 0x78c   :  { %v3353_v30 = vmax.f32 %v3347_v3, 0.0  ;;  %v3354_v31 = vmax.f32 %v3348_v17, 0.0  ;;  %v3355_v32 = vmax.f32 %v3349_v21, 0.0  ;;  %v3356_v33 = vmax.f32 %v3350_v23, 0.0 }
 0x78d   :  { %v3357_v34 = vmax.f32 %v3351_v28, 0.0  ;;  %v3358_v35 = vmax.f32 %v3352_v29, 0.0 }
 0x78e   :  { %3359 = vst [vmem:[%s4491_s5] sm:$0xff] %v3353_v30  ;;  %3360 = vst [vmem:[%s4491_s5 + $0x8] sm:$0xff] %v3354_v31 }
 0x78f   :  { %3361 = vst [vmem:[%s4491_s5 + $0x10] sm:$0xff] %v3355_v32  ;;  %3362 = vst [vmem:[%s4491_s5 + $0x18] sm:$0xff] %v3356_v33 }
 0x790   :  { %3363 = vst [vmem:[%s4491_s5 + $0x20] sm:$0xff] %v3357_v34  ;;  %3364 = vst [vmem:[%s4491_s5 + $0x28] sm:$0xff] %v3358_v35 }

</bundles_post_ra>
